<compile_context>
chip_gen: v6e
topology: v6e:2x2x1
jax: 0.10.0
libtpu: 0.0.40
codegen_flags: <defaults>
</compile_context>

<pallas_src>
import jax
import jax.numpy as jnp
from jax.experimental import pallas as pl
from jax.experimental.pallas import tpu as pltpu


def _make_lstm_kernel(Tc, B, H, padding_value, project):
    """One grid step = one chunk of Tc timesteps over the whole (padded) batch."""

    def kernel(*refs):
        if project:
            (x_ref, len_ref, wih_ref, whh_ref, b_ref, h0_ref, c0_ref,
             wout_ref, bout_ref,
             y_ref, hT_ref, cT_ref,
             gx_s, hseq_s) = refs
        else:
            (x_ref, len_ref, wih_ref, whh_ref, b_ref, h0_ref, c0_ref,
             hT_ref, cT_ref,
             gx_s) = refs

        chunk = pl.program_id(0)

        # hT/cT output blocks have a constant index_map -> VMEM-resident across the
        # time grid; they carry the recurrent state between chunks.
        @pl.when(chunk == 0)
        def _():
            hT_ref[...] = h0_ref[...]
            cT_ref[...] = c0_ref[...]

        # ---- (1) batched input projection for this chunk: one MXU matmul ----
        gx_s[...] = (jnp.dot(x_ref[...], wih_ref[...],
                             preferred_element_type=jnp.float32)
                     + b_ref[...])

        # ---- (2) serial recurrence; loop invariants hoisted out of the step ----
        whh = whh_ref[...]                       # W_hh^T stationary across the loop
        lengths = len_ref[...]                   # [B, 1] int32
        t0 = chunk * Tc
        if project:
            pad_row = jnp.full((B, H), padding_value, jnp.float32)

        def sigm(z):                             # sigmoid(z) = 0.5*tanh(z/2)+0.5 (1 EUP push)
            return 0.5 * jnp.tanh(0.5 * z) + 0.5

        def step(s, carry):
            h_prev = hT_ref[...]                 # [B, H] f32
            c_prev = cT_ref[...]
            row = pl.multiple_of(s * B, B)       # sublane-aligned slice into gx scratch
            gates = gx_s[pl.ds(row, B), :] + jnp.dot(
                h_prev.astype(jnp.bfloat16), whh,
                preferred_element_type=jnp.float32)          # [B, 4H] f32

            # PyTorch gate order: i, f, g, o
            i_g = sigm(gates[:, 0 * H:1 * H])
            f_g = sigm(gates[:, 1 * H:2 * H])
            g_g = jnp.tanh(gates[:, 2 * H:3 * H])
            o_g = sigm(gates[:, 3 * H:4 * H])

            c_new = f_g * c_prev + i_g * g_g
            h_new = o_g * jnp.tanh(c_new)

            valid = jnp.broadcast_to((t0 + s) < lengths, (B, H))   # one broadcast, reused
            hT_ref[...] = jnp.where(valid, h_new, h_prev)          # freeze past seq_len
            cT_ref[...] = jnp.where(valid, c_new, c_prev)
            if project:
                hseq_s[pl.ds(row, B), :] = jnp.where(
                    valid, h_new, pad_row).astype(jnp.bfloat16)
            return carry

        jax.lax.fori_loop(0, Tc, step, 0, unroll=min(Tc, 8))

        # ---- (3) decoder only: one output-projection matmul per chunk ----
        if project:
            y_ref[...] = (jnp.dot(hseq_s[...], wout_ref[...],
                                  preferred_element_type=jnp.float32)
                          + bout_ref[...])

    return kernel


def lstm_pallas(x2d, lengths, h0, c0, wih_t, whh_t, b, padding_value, T,
                wout_t=None, bout=None, t_chunk=8):
    """x2d: [T*B, I] time-major-flattened (bf16).  Returns (y2d|None, h_T, c_T)."""
    TB, I = x2d.shape
    B, H = h0.shape
    assert TB == T * B and B % 16 == 0
    project = wout_t is not None
    out_dim = wout_t.shape[-1] if project else None

    # ---- time chunking: bound VMEM to O(Tc*B), let Pallas pipeline x / y DMAs ----
    Tc = max(1, min(int(t_chunk), T))
    nT = -(-T // Tc)
    T_pad = nT * Tc
    if T_pad != T:
        # padded timesteps are masked out in-kernel by `t < length`
        x2d = jnp.pad(x2d, ((0, (T_pad - T) * B), (0, 0)))

    chunk_map = lambda t: (t, 0)
    const_map = lambda t: (0, 0)

    in_specs = [
        pl.BlockSpec((Tc * B, I), chunk_map),    # x chunk (bf16)
        pl.BlockSpec((B, 1), const_map),         # sequence lengths (int32)
        pl.BlockSpec((I, 4 * H), const_map),     # W_ih^T (bf16)
        pl.BlockSpec((H, 4 * H), const_map),     # W_hh^T (bf16)
        pl.BlockSpec((1, 4 * H), const_map),     # b_ih + b_hh (f32)
        pl.BlockSpec((B, H), const_map),         # h0 (f32)
        pl.BlockSpec((B, H), const_map),         # c0 (f32)
    ]
    args = [x2d, lengths, wih_t, whh_t, b, h0, c0]
    scratch = [pltpu.VMEM((Tc * B, 4 * H), jnp.float32)]      # chunk's x-gates

    flops = 2 * T_pad * B * I * 4 * H + 2 * T_pad * B * H * 4 * H
    bytes_accessed = (T_pad * B * I * 2 + I * 4 * H * 2 + H * 4 * H * 2
                      + 4 * H * 4 + 4 * B * H * 4)

    if project:
        in_specs += [pl.BlockSpec((H, out_dim), const_map),    # W_out^T (bf16)
                     pl.BlockSpec((1, out_dim), const_map)]    # b_out (f32)
        args += [wout_t, bout]
        out_shape = (jax.ShapeDtypeStruct((T_pad * B, out_dim), jnp.float32),
                     jax.ShapeDtypeStruct((B, H), jnp.float32),
                     jax.ShapeDtypeStruct((B, H), jnp.float32))
        out_specs = [pl.BlockSpec((Tc * B, out_dim), chunk_map),
                     pl.BlockSpec((B, H), const_map),
                     pl.BlockSpec((B, H), const_map)]
        scratch += [pltpu.VMEM((Tc * B, H), jnp.bfloat16)]     # masked h history (bf16)
        flops += 2 * T_pad * B * H * out_dim
        bytes_accessed += T_pad * B * out_dim * 4 + H * out_dim * 2 + out_dim * 4
    else:
        # encoder: per-step outputs are never consumed -> don't allocate / write them
        out_shape = (jax.ShapeDtypeStruct((B, H), jnp.float32),
                     jax.ShapeDtypeStruct((B, H), jnp.float32))
        out_specs = [pl.BlockSpec((B, H), const_map),
                     pl.BlockSpec((B, H), const_map)]

    kernel = _make_lstm_kernel(Tc, B, H, float(padding_value), project)
    outs = pl.pallas_call(
        kernel,
        out_shape=out_shape,
        grid_spec=pltpu.PrefetchScalarGridSpec(
            num_scalar_prefetch=0,
            grid=(nT,),
            in_specs=in_specs,
            out_specs=out_specs,
            scratch_shapes=scratch),
        compiler_params=pltpu.CompilerParams(
            dimension_semantics=("arbitrary",),          # sequential recurrence over time
            vmem_limit_bytes=32 * 1024 * 1024),
        cost_estimate=pl.CostEstimate(
            flops=int(flops),
            transcendentals=int(5 * T_pad * B * H),
            bytes_accessed=int(bytes_accessed)),
    )(*args)

    if project:
        y2d, hT, cT = outs
        return y2d[: T * B], hT, cT          # trim time padding
    hT, cT = outs
    return None, hT, cT


def _uniform(key, shape, scale):
    return jax.random.uniform(key, shape, jnp.float32, -scale, scale)


class Seq2SeqPallas:
    """JAX/Pallas port of the PyTorch Seq2Seq(encoder, decoder) forward pass."""

    def __init__(self, input_size, hidden_size, key, t_chunk=8):
        self.input_size = input_size
        self.hidden_size = hidden_size
        self.t_chunk = t_chunk
        k = 1.0 / (hidden_size ** 0.5)       # PyTorch default LSTM/Linear init range
        keys = jax.random.split(key, 10)
        # encoder LSTM (PyTorch layout W_ih [4H, I], W_hh [4H, H]; stored transposed,
        # MXU operands kept in bf16, biases / state in f32)
        self.enc_wih_t = _uniform(keys[0], (4 * hidden_size, input_size), k).T.astype(jnp.bfloat16)
        self.enc_whh_t = _uniform(keys[1], (4 * hidden_size, hidden_size), k).T.astype(jnp.bfloat16)
        self.enc_b = (_uniform(keys[2], (4 * hidden_size,), k)
                      + _uniform(keys[3], (4 * hidden_size,), k)).reshape(1, -1)
        # decoder LSTM
        self.dec_wih_t = _uniform(keys[4], (4 * hidden_size, input_size), k).T.astype(jnp.bfloat16)
        self.dec_whh_t = _uniform(keys[5], (4 * hidden_size, hidden_size), k).T.astype(jnp.bfloat16)
        self.dec_b = (_uniform(keys[6], (4 * hidden_size,), k)
                      + _uniform(keys[7], (4 * hidden_size,), k)).reshape(1, -1)
        # decoder output projection: Linear(hidden_size, input_size)
        self.dec_wout_t = _uniform(keys[8], (input_size, hidden_size), k).T.astype(jnp.bfloat16)
        self.dec_bout = _uniform(keys[9], (input_size,), k).reshape(1, -1)

    @staticmethod
    def _prep(x, seq_lengths, h0, c0):
        """Pad batch to a multiple of 16 sublanes (bf16 tiling) and flatten time-major."""
        B, T, I = x.shape
        Bp = -(-B // 16) * 16
        pad = Bp - B
        lengths = seq_lengths.astype(jnp.int32).reshape(-1, 1)
        if pad:
            x = jnp.pad(x, ((0, pad), (0, 0), (0, 0)))
            lengths = jnp.pad(lengths, ((0, pad), (0, 0)))   # len 0 -> state frozen
            h0 = jnp.pad(h0, ((0, pad), (0, 0)))
            c0 = jnp.pad(c0, ((0, pad), (0, 0)))
        x2d = jnp.transpose(x, (1, 0, 2)).reshape(T * Bp, I).astype(jnp.bfloat16)
        return x2d, lengths, h0, c0, B, Bp, T

    def forward(self, x_enc, x_dec, x_seq_lengths, hc_init, padding_value,
                max_seq_len):
        # x_enc, x_dec: [B, T, I] (batch_first=True); hc_init: (h0, c0) each [1, B, H]
        assert x_enc.shape[1] == max_seq_len and x_dec.shape[1] == max_seq_len
        h0, c0 = hc_init
        xe2d, lengths, h0p, c0p, B, Bp, T = self._prep(x_enc, x_seq_lengths,
                                                       h0[0], c0[0])
        xd2d, _, _, _, _, _, _ = self._prep(x_dec, x_seq_lengths, h0[0], c0[0])

        # encoder: packed-sequence semantics via mask; only final (h, c) is produced
        _, h_enc, c_enc = lstm_pallas(
            xe2d, lengths, h0p, c0p,
            self.enc_wih_t, self.enc_whh_t, self.enc_b, padding_value, T,
            t_chunk=self.t_chunk)

        # decoder: LSTM initialized with encoder final state + fused Linear projection
        y2d, _, _ = lstm_pallas(
            xd2d, lengths, h_enc, c_enc,
            self.dec_wih_t, self.dec_whh_t, self.dec_b, padding_value, T,
            wout_t=self.dec_wout_t, bout=self.dec_bout, t_chunk=self.t_chunk)

        y_tm = y2d.reshape(T, Bp, self.input_size)
        x_dec_out = jnp.transpose(y_tm, (1, 0, 2))[:B]           # [B, T, I]
        hc_enc = (h_enc[None, :B], c_enc[None, :B])              # each [1, B, H]
        return x_dec_out, hc_enc

    def get_embeddings_only(self, x_enc, x_seq_lengths, hc_init, padding_value,
                            max_seq_len):
        h0, c0 = hc_init
        xe2d, lengths, h0p, c0p, B, _, T = self._prep(x_enc, x_seq_lengths,
                                                      h0[0], c0[0])
        _, h_enc, c_enc = lstm_pallas(
            xe2d, lengths, h0p, c0p,
            self.enc_wih_t, self.enc_whh_t, self.enc_b, padding_value, T,
            t_chunk=self.t_chunk)
        return (h_enc[None, :B], c_enc[None, :B])


def _ref_lstm(x, lens, h0, c0, wih_t, whh_t, bias, pad_val):
    """Pure-JAX reference LSTM with pack/pad masking semantics (f32)."""
    Bq, Tq, _ = x.shape
    Hq = h0.shape[-1]
    wih = wih_t.astype(jnp.float32)
    whh = whh_t.astype(jnp.float32)
    h, c = h0, c0
    outs = []
    for t in range(Tq):
        g = x[:, t, :] @ wih + h @ whh + bias
        i_g = jax.nn.sigmoid(g[:, :Hq])
        f_g = jax.nn.sigmoid(g[:, Hq:2 * Hq])
        g_g = jnp.tanh(g[:, 2 * Hq:3 * Hq])
        o_g = jax.nn.sigmoid(g[:, 3 * Hq:])
        c_n = f_g * c + i_g * g_g
        h_n = o_g * jnp.tanh(c_n)
        valid = (t < lens)[:, None]
        h = jnp.where(valid, h_n, h)
        c = jnp.where(valid, c_n, c)
        outs.append(jnp.where(valid, h_n, jnp.full_like(h_n, pad_val)))
    return jnp.stack(outs, axis=1), h, c


if __name__ == "__main__":
    B, T, I, H = 4, 8, 8, 128   # batch, max_seq_len, input_size, hidden_size (lane-aligned)
    key = jax.random.PRNGKey(0)
    k_model, k_enc, k_dec = jax.random.split(key, 3)

    # t_chunk=4 -> the time grid has 2 chunks, exercising the pipelined chunked path
    model = Seq2SeqPallas(I, H, k_model, t_chunk=4)

    x_enc = jax.random.normal(k_enc, (B, T, I), jnp.float32)
    x_dec = jax.random.normal(k_dec, (B, T, I), jnp.float32)
    x_seq_lengths = jnp.array([8, 6, 5, 3], dtype=jnp.int32)   # descending, like packed seqs
    hc_init = (jnp.zeros((1, B, H), jnp.float32),
               jnp.zeros((1, B, H), jnp.float32))
    padding_value = 0.0

    x_dec_out, hc_enc = model.forward(x_enc, x_dec, x_seq_lengths, hc_init,
                                      padding_value, T)
    jax.block_until_ready((x_dec_out, hc_enc))
    assert x_dec_out.shape == (B, T, I)
    assert hc_enc[0].shape == (1, B, H) and hc_enc[1].shape == (1, B, H)

    hc_emb = model.get_embeddings_only(x_enc, x_seq_lengths, hc_init,
                                       padding_value, T)
    jax.block_until_ready(hc_emb)
    assert hc_emb[0].shape == (1, B, H) and hc_emb[1].shape == (1, B, H)
    assert jnp.allclose(hc_emb[0], hc_enc[0], atol=1e-6)
    assert jnp.allclose(hc_emb[1], hc_enc[1], atol=1e-6)

    # pure-JAX reference (f32 math; kernel uses bf16 MXU operands -> loose tolerance)
    zeros = jnp.zeros((B, H), jnp.float32)
    _, h_e, c_e = _ref_lstm(x_enc, x_seq_lengths, zeros, zeros,
                            model.enc_wih_t, model.enc_whh_t, model.enc_b[0],
                            padding_value)
    hs_d, _, _ = _ref_lstm(x_dec, x_seq_lengths, h_e, c_e,
                           model.dec_wih_t, model.dec_whh_t, model.dec_b[0],
                           padding_value)
    y_ref = hs_d @ model.dec_wout_t.astype(jnp.float32) + model.dec_bout[0]

    assert float(jnp.max(jnp.abs(hc_enc[0][0] - h_e))) < 0.1
    assert float(jnp.max(jnp.abs(hc_enc[1][0] - c_e))) < 0.1
    assert float(jnp.max(jnp.abs(x_dec_out - y_ref))) < 0.1

    print("KERNEL_OK")
</pallas_src>

<mosaic_0001>
module attributes {stable_mosaic.version = 11 : i64} {
  func.func @kernel(%arg0: i32, %arg1: memref<64x8xbf16, #tpu.memory_space<vmem>>, %arg2: memref<16x1xi32, #tpu.memory_space<vmem>>, %arg3: memref<8x512xbf16, #tpu.memory_space<vmem>>, %arg4: memref<128x512xbf16, #tpu.memory_space<vmem>>, %arg5: memref<1x512xf32, #tpu.memory_space<vmem>>, %arg6: memref<16x128xf32, #tpu.memory_space<vmem>>, %arg7: memref<16x128xf32, #tpu.memory_space<vmem>>, %arg8: memref<16x128xf32, #tpu.memory_space<vmem>>, %arg9: memref<16x128xf32, #tpu.memory_space<vmem>>, %arg10: memref<64x512xf32, #tpu.memory_space<vmem>>) attributes {dimension_semantics = [#tpu.dimension_semantics<arbitrary>], iteration_bounds = array<i64: 2>, scalar_prefetch = 0 : i64, scratch_operands = 1 : i64, tpu.core_type = #tpu.core_type<tc>, window_params = [{transform_indices = @transform_0, window_bounds = array<i64: 64, 8>}, {pipeline_mode = #tpu.pipeline_mode<synchronous>, transform_indices = @transform_1, window_bounds = array<i64: 16, 1>}, {pipeline_mode = #tpu.pipeline_mode<synchronous>, transform_indices = @transform_2, window_bounds = array<i64: 8, 512>}, {pipeline_mode = #tpu.pipeline_mode<synchronous>, transform_indices = @transform_3, window_bounds = array<i64: 128, 512>}, {pipeline_mode = #tpu.pipeline_mode<synchronous>, transform_indices = @transform_4, window_bounds = array<i64: 1, 512>}, {pipeline_mode = #tpu.pipeline_mode<synchronous>, transform_indices = @transform_5, window_bounds = array<i64: 16, 128>}, {pipeline_mode = #tpu.pipeline_mode<synchronous>, transform_indices = @transform_6, window_bounds = array<i64: 16, 128>}, {pipeline_mode = #tpu.pipeline_mode<synchronous>, transform_indices = @transform_7, window_bounds = array<i64: 16, 128>}, {pipeline_mode = #tpu.pipeline_mode<synchronous>, transform_indices = @transform_8, window_bounds = array<i64: 16, 128>}]} {
    %c0_i32 = arith.constant 0 : i32
    %0 = arith.cmpi eq, %arg0, %c0_i32 : i32
    %1 = arith.extui %0 : i1 to i32
    %c0_i32_0 = arith.constant 0 : i32
    %2 = arith.cmpi ne, %1, %c0_i32_0 : i32
    scf.if %2 {
      %c0_93 = arith.constant 0 : index
      %c0_94 = arith.constant 0 : index
      %209 = vector.load %arg6[%c0_93, %c0_94] : memref<16x128xf32, #tpu.memory_space<vmem>>, vector<16x128xf32>
      %c0_95 = arith.constant 0 : index
      %c0_96 = arith.constant 0 : index
      %210 = vector.load %arg8[%c0_95, %c0_96] : memref<16x128xf32, #tpu.memory_space<vmem>>, vector<16x128xf32>
      tpu.vector_store %arg8[%c0_95, %c0_96], %209 {strides = array<i32>} : memref<16x128xf32, #tpu.memory_space<vmem>>, vector<16x128xf32>,
      %c0_97 = arith.constant 0 : index
      %c0_98 = arith.constant 0 : index
      %211 = vector.load %arg7[%c0_97, %c0_98] : memref<16x128xf32, #tpu.memory_space<vmem>>, vector<16x128xf32>
      %c0_99 = arith.constant 0 : index
      %c0_100 = arith.constant 0 : index
      %212 = vector.load %arg9[%c0_99, %c0_100] : memref<16x128xf32, #tpu.memory_space<vmem>>, vector<16x128xf32>
      tpu.vector_store %arg9[%c0_99, %c0_100], %211 {strides = array<i32>} : memref<16x128xf32, #tpu.memory_space<vmem>>, vector<16x128xf32>,
    } else {
    }
    %c0 = arith.constant 0 : index
    %c0_1 = arith.constant 0 : index
    %3 = vector.load %arg1[%c0, %c0_1] : memref<64x8xbf16, #tpu.memory_space<vmem>>, vector<64x8xbf16>
    %c0_2 = arith.constant 0 : index
    %c0_3 = arith.constant 0 : index
    %4 = vector.load %arg3[%c0_2, %c0_3] : memref<8x512xbf16, #tpu.memory_space<vmem>>, vector<8x512xbf16>
    %cst = arith.constant dense<0.000000e+00> : vector<64x512xf32>
    %5 = tpu.matmul %3, %4, %cst {dimension_numbers = #tpu.dot_dimension_numbers<[1], [0], [0], [1], [0, 0, 1, 1], [], []>} : vector<64x8xbf16>, vector<8x512xbf16>, vector<64x512xf32> -> vector<64x512xf32>
    %c0_4 = arith.constant 0 : index
    %c0_5 = arith.constant 0 : index
    %6 = vector.load %arg5[%c0_4, %c0_5] : memref<1x512xf32, #tpu.memory_space<vmem>>, vector<1x512xf32>
    %7 = vector.broadcast %6 : vector<1x512xf32> to vector<64x512xf32>
    %8 = arith.addf %5, %7 : vector<64x512xf32>
    %c0_6 = arith.constant 0 : index
    %c0_7 = arith.constant 0 : index
    %9 = vector.load %arg10[%c0_6, %c0_7] : memref<64x512xf32, #tpu.memory_space<vmem>>, vector<64x512xf32>
    tpu.vector_store %arg10[%c0_6, %c0_7], %8 {strides = array<i32>} : memref<64x512xf32, #tpu.memory_space<vmem>>, vector<64x512xf32>,
    %c0_8 = arith.constant 0 : index
    %c0_9 = arith.constant 0 : index
    %10 = vector.load %arg4[%c0_8, %c0_9] : memref<128x512xbf16, #tpu.memory_space<vmem>>, vector<128x512xbf16>
    %c0_10 = arith.constant 0 : index
    %c0_11 = arith.constant 0 : index
    %11 = vector.load %arg2[%c0_10, %c0_11] : memref<16x1xi32, #tpu.memory_space<vmem>>, vector<16x1xi32>
    %c4_i32 = arith.constant 4 : i32
    %12 = arith.muli %arg0, %c4_i32 : i32
    %c0_i32_12 = arith.constant 0 : i32
    %c0_13 = arith.constant 0 : index
    %c0_14 = arith.constant 0 : index
    %13 = vector.load %arg8[%c0_13, %c0_14] : memref<16x128xf32, #tpu.memory_space<vmem>>, vector<16x128xf32>
    %c0_15 = arith.constant 0 : index
    %c0_16 = arith.constant 0 : index
    %14 = vector.load %arg9[%c0_15, %c0_16] : memref<16x128xf32, #tpu.memory_space<vmem>>, vector<16x128xf32>
    %c16_i32 = arith.constant 16 : i32
    %15 = arith.muli %c0_i32_12, %c16_i32 : i32
    %16 = tpu.assume_multiple %15, 16 : i32
    %17 = arith.index_cast %16 : i32 to index
    %c0_17 = arith.constant 0 : index
    %18 = vector.load %arg10[%17, %c0_17] : memref<64x512xf32, #tpu.memory_space<vmem>>, vector<16x512xf32>
    %19 = arith.truncf %13 : vector<16x128xf32> to vector<16x128xbf16>
    %cst_18 = arith.constant dense<0.000000e+00> : vector<16x512xf32>
    %20 = tpu.matmul %19, %10, %cst_18 {dimension_numbers = #tpu.dot_dimension_numbers<[1], [0], [0], [1], [0, 0, 1, 1], [], []>} : vector<16x128xbf16>, vector<128x512xbf16>, vector<16x512xf32> -> vector<16x512xf32>
    %21 = arith.addf %18, %20 : vector<16x512xf32>
    %22 = vector.extract_strided_slice %21 {offsets = [0, 0], sizes = [16, 128], strides = [1, 1]} : vector<16x512xf32> to vector<16x128xf32>
    %cst_19 = arith.constant 5.000000e-01 : f32
    %23 = vector.broadcast %cst_19 : f32 to vector<16x128xf32>
    %24 = arith.mulf %23, %22 : vector<16x128xf32>
    %25 = math.tanh %24 : vector<16x128xf32>
    %cst_20 = arith.constant 5.000000e-01 : f32
    %26 = vector.broadcast %cst_20 : f32 to vector<16x128xf32>
    %27 = arith.mulf %26, %25 : vector<16x128xf32>
    %cst_21 = arith.constant 5.000000e-01 : f32
    %28 = vector.broadcast %cst_21 : f32 to vector<16x128xf32>
    %29 = arith.addf %27, %28 : vector<16x128xf32>
    %30 = vector.extract_strided_slice %21 {offsets = [0, 128], sizes = [16, 128], strides = [1, 1]} : vector<16x512xf32> to vector<16x128xf32>
    %cst_22 = arith.constant 5.000000e-01 : f32
    %31 = vector.broadcast %cst_22 : f32 to vector<16x128xf32>
    %32 = arith.mulf %31, %30 : vector<16x128xf32>
    %33 = math.tanh %32 : vector<16x128xf32>
    %cst_23 = arith.constant 5.000000e-01 : f32
    %34 = vector.broadcast %cst_23 : f32 to vector<16x128xf32>
    %35 = arith.mulf %34, %33 : vector<16x128xf32>
    %cst_24 = arith.constant 5.000000e-01 : f32
    %36 = vector.broadcast %cst_24 : f32 to vector<16x128xf32>
    %37 = arith.addf %35, %36 : vector<16x128xf32>
    %38 = vector.extract_strided_slice %21 {offsets = [0, 256], sizes = [16, 128], strides = [1, 1]} : vector<16x512xf32> to vector<16x128xf32>
    %39 = math.tanh %38 : vector<16x128xf32>
    %40 = vector.extract_strided_slice %21 {offsets = [0, 384], sizes = [16, 128], strides = [1, 1]} : vector<16x512xf32> to vector<16x128xf32>
    %cst_25 = arith.constant 5.000000e-01 : f32
    %41 = vector.broadcast %cst_25 : f32 to vector<16x128xf32>
    %42 = arith.mulf %41, %40 : vector<16x128xf32>
    %43 = math.tanh %42 : vector<16x128xf32>
    %cst_26 = arith.constant 5.000000e-01 : f32
    %44 = vector.broadcast %cst_26 : f32 to vector<16x128xf32>
    %45 = arith.mulf %44, %43 : vector<16x128xf32>
    %cst_27 = arith.constant 5.000000e-01 : f32
    %46 = vector.broadcast %cst_27 : f32 to vector<16x128xf32>
    %47 = arith.addf %45, %46 : vector<16x128xf32>
    %48 = arith.mulf %37, %14 : vector<16x128xf32>
    %49 = arith.mulf %29, %39 : vector<16x128xf32>
    %50 = arith.addf %48, %49 : vector<16x128xf32>
    %51 = math.tanh %50 : vector<16x128xf32>
    %52 = arith.mulf %47, %51 : vector<16x128xf32>
    %53 = arith.addi %12, %c0_i32_12 : i32
    %54 = vector.broadcast %53 : i32 to vector<16x1xi32>
    %55 = arith.cmpi slt, %54, %11 : vector<16x1xi32>
    %56 = vector.shape_cast %55 : vector<16x1xi1> to vector<16x1xi1>
    %57 = vector.broadcast %56 : vector<16x1xi1> to vector<16x128xi1>
    %58 = arith.select %57, %52, %13 : vector<16x128xi1>, vector<16x128xf32>
    %c0_28 = arith.constant 0 : index
    %c0_29 = arith.constant 0 : index
    %59 = vector.load %arg8[%c0_28, %c0_29] : memref<16x128xf32, #tpu.memory_space<vmem>>, vector<16x128xf32>
    tpu.vector_store %arg8[%c0_28, %c0_29], %58 {strides = array<i32>} : memref<16x128xf32, #tpu.memory_space<vmem>>, vector<16x128xf32>,
    %60 = arith.select %57, %50, %14 : vector<16x128xi1>, vector<16x128xf32>
    %c0_30 = arith.constant 0 : index
    %c0_31 = arith.constant 0 : index
    %61 = vector.load %arg9[%c0_30, %c0_31] : memref<16x128xf32, #tpu.memory_space<vmem>>, vector<16x128xf32>
    tpu.vector_store %arg9[%c0_30, %c0_31], %60 {strides = array<i32>} : memref<16x128xf32, #tpu.memory_space<vmem>>, vector<16x128xf32>,
    %c1_i32 = arith.constant 1 : i32
    %c0_32 = arith.constant 0 : index
    %c0_33 = arith.constant 0 : index
    %62 = vector.load %arg8[%c0_32, %c0_33] : memref<16x128xf32, #tpu.memory_space<vmem>>, vector<16x128xf32>
    %c0_34 = arith.constant 0 : index
    %c0_35 = arith.constant 0 : index
    %63 = vector.load %arg9[%c0_34, %c0_35] : memref<16x128xf32, #tpu.memory_space<vmem>>, vector<16x128xf32>
    %c16_i32_36 = arith.constant 16 : i32
    %64 = arith.muli %c1_i32, %c16_i32_36 : i32
    %65 = tpu.assume_multiple %64, 16 : i32
    %66 = arith.index_cast %65 : i32 to index
    %c0_37 = arith.constant 0 : index
    %67 = vector.load %arg10[%66, %c0_37] : memref<64x512xf32, #tpu.memory_space<vmem>>, vector<16x512xf32>
    %68 = arith.truncf %62 : vector<16x128xf32> to vector<16x128xbf16>
    %cst_38 = arith.constant dense<0.000000e+00> : vector<16x512xf32>
    %69 = tpu.matmul %68, %10, %cst_38 {dimension_numbers = #tpu.dot_dimension_numbers<[1], [0], [0], [1], [0, 0, 1, 1], [], []>} : vector<16x128xbf16>, vector<128x512xbf16>, vector<16x512xf32> -> vector<16x512xf32>
    %70 = arith.addf %67, %69 : vector<16x512xf32>
    %71 = vector.extract_strided_slice %70 {offsets = [0, 0], sizes = [16, 128], strides = [1, 1]} : vector<16x512xf32> to vector<16x128xf32>
    %cst_39 = arith.constant 5.000000e-01 : f32
    %72 = vector.broadcast %cst_39 : f32 to vector<16x128xf32>
    %73 = arith.mulf %72, %71 : vector<16x128xf32>
    %74 = math.tanh %73 : vector<16x128xf32>
    %cst_40 = arith.constant 5.000000e-01 : f32
    %75 = vector.broadcast %cst_40 : f32 to vector<16x128xf32>
    %76 = arith.mulf %75, %74 : vector<16x128xf32>
    %cst_41 = arith.constant 5.000000e-01 : f32
    %77 = vector.broadcast %cst_41 : f32 to vector<16x128xf32>
    %78 = arith.addf %76, %77 : vector<16x128xf32>
    %79 = vector.extract_strided_slice %70 {offsets = [0, 128], sizes = [16, 128], strides = [1, 1]} : vector<16x512xf32> to vector<16x128xf32>
    %cst_42 = arith.constant 5.000000e-01 : f32
    %80 = vector.broadcast %cst_42 : f32 to vector<16x128xf32>
    %81 = arith.mulf %80, %79 : vector<16x128xf32>
    %82 = math.tanh %81 : vector<16x128xf32>
    %cst_43 = arith.constant 5.000000e-01 : f32
    %83 = vector.broadcast %cst_43 : f32 to vector<16x128xf32>
    %84 = arith.mulf %83, %82 : vector<16x128xf32>
    %cst_44 = arith.constant 5.000000e-01 : f32
    %85 = vector.broadcast %cst_44 : f32 to vector<16x128xf32>
    %86 = arith.addf %84, %85 : vector<16x128xf32>
    %87 = vector.extract_strided_slice %70 {offsets = [0, 256], sizes = [16, 128], strides = [1, 1]} : vector<16x512xf32> to vector<16x128xf32>
    %88 = math.tanh %87 : vector<16x128xf32>
    %89 = vector.extract_strided_slice %70 {offsets = [0, 384], sizes = [16, 128], strides = [1, 1]} : vector<16x512xf32> to vector<16x128xf32>
    %cst_45 = arith.constant 5.000000e-01 : f32
    %90 = vector.broadcast %cst_45 : f32 to vector<16x128xf32>
    %91 = arith.mulf %90, %89 : vector<16x128xf32>
    %92 = math.tanh %91 : vector<16x128xf32>
    %cst_46 = arith.constant 5.000000e-01 : f32
    %93 = vector.broadcast %cst_46 : f32 to vector<16x128xf32>
    %94 = arith.mulf %93, %92 : vector<16x128xf32>
    %cst_47 = arith.constant 5.000000e-01 : f32
    %95 = vector.broadcast %cst_47 : f32 to vector<16x128xf32>
    %96 = arith.addf %94, %95 : vector<16x128xf32>
    %97 = arith.mulf %86, %63 : vector<16x128xf32>
    %98 = arith.mulf %78, %88 : vector<16x128xf32>
    %99 = arith.addf %97, %98 : vector<16x128xf32>
    %100 = math.tanh %99 : vector<16x128xf32>
    %101 = arith.mulf %96, %100 : vector<16x128xf32>
    %102 = arith.addi %12, %c1_i32 : i32
    %103 = vector.broadcast %102 : i32 to vector<16x1xi32>
    %104 = arith.cmpi slt, %103, %11 : vector<16x1xi32>
    %105 = vector.shape_cast %104 : vector<16x1xi1> to vector<16x1xi1>
    %106 = vector.broadcast %105 : vector<16x1xi1> to vector<16x128xi1>
    %107 = arith.select %106, %101, %62 : vector<16x128xi1>, vector<16x128xf32>
    %c0_48 = arith.constant 0 : index
    %c0_49 = arith.constant 0 : index
    %108 = vector.load %arg8[%c0_48, %c0_49] : memref<16x128xf32, #tpu.memory_space<vmem>>, vector<16x128xf32>
    tpu.vector_store %arg8[%c0_48, %c0_49], %107 {strides = array<i32>} : memref<16x128xf32, #tpu.memory_space<vmem>>, vector<16x128xf32>,
    %109 = arith.select %106, %99, %63 : vector<16x128xi1>, vector<16x128xf32>
    %c0_50 = arith.constant 0 : index
    %c0_51 = arith.constant 0 : index
    %110 = vector.load %arg9[%c0_50, %c0_51] : memref<16x128xf32, #tpu.memory_space<vmem>>, vector<16x128xf32>
    tpu.vector_store %arg9[%c0_50, %c0_51], %109 {strides = array<i32>} : memref<16x128xf32, #tpu.memory_space<vmem>>, vector<16x128xf32>,
    %c2_i32 = arith.constant 2 : i32
    %c0_52 = arith.constant 0 : index
    %c0_53 = arith.constant 0 : index
    %111 = vector.load %arg8[%c0_52, %c0_53] : memref<16x128xf32, #tpu.memory_space<vmem>>, vector<16x128xf32>
    %c0_54 = arith.constant 0 : index
    %c0_55 = arith.constant 0 : index
    %112 = vector.load %arg9[%c0_54, %c0_55] : memref<16x128xf32, #tpu.memory_space<vmem>>, vector<16x128xf32>
    %c16_i32_56 = arith.constant 16 : i32
    %113 = arith.muli %c2_i32, %c16_i32_56 : i32
    %114 = tpu.assume_multiple %113, 16 : i32
    %115 = arith.index_cast %114 : i32 to index
    %c0_57 = arith.constant 0 : index
    %116 = vector.load %arg10[%115, %c0_57] : memref<64x512xf32, #tpu.memory_space<vmem>>, vector<16x512xf32>
    %117 = arith.truncf %111 : vector<16x128xf32> to vector<16x128xbf16>
    %cst_58 = arith.constant dense<0.000000e+00> : vector<16x512xf32>
    %118 = tpu.matmul %117, %10, %cst_58 {dimension_numbers = #tpu.dot_dimension_numbers<[1], [0], [0], [1], [0, 0, 1, 1], [], []>} : vector<16x128xbf16>, vector<128x512xbf16>, vector<16x512xf32> -> vector<16x512xf32>
    %119 = arith.addf %116, %118 : vector<16x512xf32>
    %120 = vector.extract_strided_slice %119 {offsets = [0, 0], sizes = [16, 128], strides = [1, 1]} : vector<16x512xf32> to vector<16x128xf32>
    %cst_59 = arith.constant 5.000000e-01 : f32
    %121 = vector.broadcast %cst_59 : f32 to vector<16x128xf32>
    %122 = arith.mulf %121, %120 : vector<16x128xf32>
    %123 = math.tanh %122 : vector<16x128xf32>
    %cst_60 = arith.constant 5.000000e-01 : f32
    %124 = vector.broadcast %cst_60 : f32 to vector<16x128xf32>
    %125 = arith.mulf %124, %123 : vector<16x128xf32>
    %cst_61 = arith.constant 5.000000e-01 : f32
    %126 = vector.broadcast %cst_61 : f32 to vector<16x128xf32>
    %127 = arith.addf %125, %126 : vector<16x128xf32>
    %128 = vector.extract_strided_slice %119 {offsets = [0, 128], sizes = [16, 128], strides = [1, 1]} : vector<16x512xf32> to vector<16x128xf32>
    %cst_62 = arith.constant 5.000000e-01 : f32
    %129 = vector.broadcast %cst_62 : f32 to vector<16x128xf32>
    %130 = arith.mulf %129, %128 : vector<16x128xf32>
    %131 = math.tanh %130 : vector<16x128xf32>
    %cst_63 = arith.constant 5.000000e-01 : f32
    %132 = vector.broadcast %cst_63 : f32 to vector<16x128xf32>
    %133 = arith.mulf %132, %131 : vector<16x128xf32>
    %cst_64 = arith.constant 5.000000e-01 : f32
    %134 = vector.broadcast %cst_64 : f32 to vector<16x128xf32>
    %135 = arith.addf %133, %134 : vector<16x128xf32>
    %136 = vector.extract_strided_slice %119 {offsets = [0, 256], sizes = [16, 128], strides = [1, 1]} : vector<16x512xf32> to vector<16x128xf32>
    %137 = math.tanh %136 : vector<16x128xf32>
    %138 = vector.extract_strided_slice %119 {offsets = [0, 384], sizes = [16, 128], strides = [1, 1]} : vector<16x512xf32> to vector<16x128xf32>
    %cst_65 = arith.constant 5.000000e-01 : f32
    %139 = vector.broadcast %cst_65 : f32 to vector<16x128xf32>
    %140 = arith.mulf %139, %138 : vector<16x128xf32>
    %141 = math.tanh %140 : vector<16x128xf32>
    %cst_66 = arith.constant 5.000000e-01 : f32
    %142 = vector.broadcast %cst_66 : f32 to vector<16x128xf32>
    %143 = arith.mulf %142, %141 : vector<16x128xf32>
    %cst_67 = arith.constant 5.000000e-01 : f32
    %144 = vector.broadcast %cst_67 : f32 to vector<16x128xf32>
    %145 = arith.addf %143, %144 : vector<16x128xf32>
    %146 = arith.mulf %135, %112 : vector<16x128xf32>
    %147 = arith.mulf %127, %137 : vector<16x128xf32>
    %148 = arith.addf %146, %147 : vector<16x128xf32>
    %149 = math.tanh %148 : vector<16x128xf32>
    %150 = arith.mulf %145, %149 : vector<16x128xf32>
    %151 = arith.addi %12, %c2_i32 : i32
    %152 = vector.broadcast %151 : i32 to vector<16x1xi32>
    %153 = arith.cmpi slt, %152, %11 : vector<16x1xi32>
    %154 = vector.shape_cast %153 : vector<16x1xi1> to vector<16x1xi1>
    %155 = vector.broadcast %154 : vector<16x1xi1> to vector<16x128xi1>
    %156 = arith.select %155, %150, %111 : vector<16x128xi1>, vector<16x128xf32>
    %c0_68 = arith.constant 0 : index
    %c0_69 = arith.constant 0 : index
    %157 = vector.load %arg8[%c0_68, %c0_69] : memref<16x128xf32, #tpu.memory_space<vmem>>, vector<16x128xf32>
    tpu.vector_store %arg8[%c0_68, %c0_69], %156 {strides = array<i32>} : memref<16x128xf32, #tpu.memory_space<vmem>>, vector<16x128xf32>,
    %158 = arith.select %155, %148, %112 : vector<16x128xi1>, vector<16x128xf32>
    %c0_70 = arith.constant 0 : index
    %c0_71 = arith.constant 0 : index
    %159 = vector.load %arg9[%c0_70, %c0_71] : memref<16x128xf32, #tpu.memory_space<vmem>>, vector<16x128xf32>
    tpu.vector_store %arg9[%c0_70, %c0_71], %158 {strides = array<i32>} : memref<16x128xf32, #tpu.memory_space<vmem>>, vector<16x128xf32>,
    %c3_i32 = arith.constant 3 : i32
    %c0_72 = arith.constant 0 : index
    %c0_73 = arith.constant 0 : index
    %160 = vector.load %arg8[%c0_72, %c0_73] : memref<16x128xf32, #tpu.memory_space<vmem>>, vector<16x128xf32>
    %c0_74 = arith.constant 0 : index
    %c0_75 = arith.constant 0 : index
    %161 = vector.load %arg9[%c0_74, %c0_75] : memref<16x128xf32, #tpu.memory_space<vmem>>, vector<16x128xf32>
    %c16_i32_76 = arith.constant 16 : i32
    %162 = arith.muli %c3_i32, %c16_i32_76 : i32
    %163 = tpu.assume_multiple %162, 16 : i32
    %164 = arith.index_cast %163 : i32 to index
    %c0_77 = arith.constant 0 : index
    %165 = vector.load %arg10[%164, %c0_77] : memref<64x512xf32, #tpu.memory_space<vmem>>, vector<16x512xf32>
    %166 = arith.truncf %160 : vector<16x128xf32> to vector<16x128xbf16>
    %cst_78 = arith.constant dense<0.000000e+00> : vector<16x512xf32>
    %167 = tpu.matmul %166, %10, %cst_78 {dimension_numbers = #tpu.dot_dimension_numbers<[1], [0], [0], [1], [0, 0, 1, 1], [], []>} : vector<16x128xbf16>, vector<128x512xbf16>, vector<16x512xf32> -> vector<16x512xf32>
    %168 = arith.addf %165, %167 : vector<16x512xf32>
    %169 = vector.extract_strided_slice %168 {offsets = [0, 0], sizes = [16, 128], strides = [1, 1]} : vector<16x512xf32> to vector<16x128xf32>
    %cst_79 = arith.constant 5.000000e-01 : f32
    %170 = vector.broadcast %cst_79 : f32 to vector<16x128xf32>
    %171 = arith.mulf %170, %169 : vector<16x128xf32>
    %172 = math.tanh %171 : vector<16x128xf32>
    %cst_80 = arith.constant 5.000000e-01 : f32
    %173 = vector.broadcast %cst_80 : f32 to vector<16x128xf32>
    %174 = arith.mulf %173, %172 : vector<16x128xf32>
    %cst_81 = arith.constant 5.000000e-01 : f32
    %175 = vector.broadcast %cst_81 : f32 to vector<16x128xf32>
    %176 = arith.addf %174, %175 : vector<16x128xf32>
    %177 = vector.extract_strided_slice %168 {offsets = [0, 128], sizes = [16, 128], strides = [1, 1]} : vector<16x512xf32> to vector<16x128xf32>
    %cst_82 = arith.constant 5.000000e-01 : f32
    %178 = vector.broadcast %cst_82 : f32 to vector<16x128xf32>
    %179 = arith.mulf %178, %177 : vector<16x128xf32>
    %180 = math.tanh %179 : vector<16x128xf32>
    %cst_83 = arith.constant 5.000000e-01 : f32
    %181 = vector.broadcast %cst_83 : f32 to vector<16x128xf32>
    %182 = arith.mulf %181, %180 : vector<16x128xf32>
    %cst_84 = arith.constant 5.000000e-01 : f32
    %183 = vector.broadcast %cst_84 : f32 to vector<16x128xf32>
    %184 = arith.addf %182, %183 : vector<16x128xf32>
    %185 = vector.extract_strided_slice %168 {offsets = [0, 256], sizes = [16, 128], strides = [1, 1]} : vector<16x512xf32> to vector<16x128xf32>
    %186 = math.tanh %185 : vector<16x128xf32>
    %187 = vector.extract_strided_slice %168 {offsets = [0, 384], sizes = [16, 128], strides = [1, 1]} : vector<16x512xf32> to vector<16x128xf32>
    %cst_85 = arith.constant 5.000000e-01 : f32
    %188 = vector.broadcast %cst_85 : f32 to vector<16x128xf32>
    %189 = arith.mulf %188, %187 : vector<16x128xf32>
    %190 = math.tanh %189 : vector<16x128xf32>
    %cst_86 = arith.constant 5.000000e-01 : f32
    %191 = vector.broadcast %cst_86 : f32 to vector<16x128xf32>
    %192 = arith.mulf %191, %190 : vector<16x128xf32>
    %cst_87 = arith.constant 5.000000e-01 : f32
    %193 = vector.broadcast %cst_87 : f32 to vector<16x128xf32>
    %194 = arith.addf %192, %193 : vector<16x128xf32>
    %195 = arith.mulf %184, %161 : vector<16x128xf32>
    %196 = arith.mulf %176, %186 : vector<16x128xf32>
    %197 = arith.addf %195, %196 : vector<16x128xf32>
    %198 = math.tanh %197 : vector<16x128xf32>
    %199 = arith.mulf %194, %198 : vector<16x128xf32>
    %200 = arith.addi %12, %c3_i32 : i32
    %201 = vector.broadcast %200 : i32 to vector<16x1xi32>
    %202 = arith.cmpi slt, %201, %11 : vector<16x1xi32>
    %203 = vector.shape_cast %202 : vector<16x1xi1> to vector<16x1xi1>
    %204 = vector.broadcast %203 : vector<16x1xi1> to vector<16x128xi1>
    %205 = arith.select %204, %199, %160 : vector<16x128xi1>, vector<16x128xf32>
    %c0_88 = arith.constant 0 : index
    %c0_89 = arith.constant 0 : index
    %206 = vector.load %arg8[%c0_88, %c0_89] : memref<16x128xf32, #tpu.memory_space<vmem>>, vector<16x128xf32>
    tpu.vector_store %arg8[%c0_88, %c0_89], %205 {strides = array<i32>} : memref<16x128xf32, #tpu.memory_space<vmem>>, vector<16x128xf32>,
    %207 = arith.select %204, %197, %161 : vector<16x128xi1>, vector<16x128xf32>
    %c0_90 = arith.constant 0 : index
    %c0_91 = arith.constant 0 : index
    %208 = vector.load %arg9[%c0_90, %c0_91] : memref<16x128xf32, #tpu.memory_space<vmem>>, vector<16x128xf32>
    tpu.vector_store %arg9[%c0_90, %c0_91], %207 {strides = array<i32>} : memref<16x128xf32, #tpu.memory_space<vmem>>, vector<16x128xf32>,
    %c4_i32_92 = arith.constant 4 : i32
    return
  }
  func.func @transform_0(%arg0: i32) -> (i32, i32) {
    %c0_i32 = arith.constant 0 : i32
    %c0_i32_0 = arith.constant 0 : i32
    return %arg0, %c0_i32 : i32, i32
  }
  func.func @transform_1(%arg0: i32) -> (i32, i32) {
    %c0_i32 = arith.constant 0 : i32
    %c0_i32_0 = arith.constant 0 : i32
    %c0_i32_1 = arith.constant 0 : i32
    return %c0_i32, %c0_i32_0 : i32, i32
  }
  func.func @transform_2(%arg0: i32) -> (i32, i32) {
    %c0_i32 = arith.constant 0 : i32
    %c0_i32_0 = arith.constant 0 : i32
    %c0_i32_1 = arith.constant 0 : i32
    return %c0_i32, %c0_i32_0 : i32, i32
  }
  func.func @transform_3(%arg0: i32) -> (i32, i32) {
    %c0_i32 = arith.constant 0 : i32
    %c0_i32_0 = arith.constant 0 : i32
    %c0_i32_1 = arith.constant 0 : i32
    return %c0_i32, %c0_i32_0 : i32, i32
  }
  func.func @transform_4(%arg0: i32) -> (i32, i32) {
    %c0_i32 = arith.constant 0 : i32
    %c0_i32_0 = arith.constant 0 : i32
    %c0_i32_1 = arith.constant 0 : i32
    return %c0_i32, %c0_i32_0 : i32, i32
  }
  func.func @transform_5(%arg0: i32) -> (i32, i32) {
    %c0_i32 = arith.constant 0 : i32
    %c0_i32_0 = arith.constant 0 : i32
    %c0_i32_1 = arith.constant 0 : i32
    return %c0_i32, %c0_i32_0 : i32, i32
  }
  func.func @transform_6(%arg0: i32) -> (i32, i32) {
    %c0_i32 = arith.constant 0 : i32
    %c0_i32_0 = arith.constant 0 : i32
    %c0_i32_1 = arith.constant 0 : i32
    return %c0_i32, %c0_i32_0 : i32, i32
  }
  func.func @transform_7(%arg0: i32) -> (i32, i32) {
    %c0_i32 = arith.constant 0 : i32
    %c0_i32_0 = arith.constant 0 : i32
    %c0_i32_1 = arith.constant 0 : i32
    return %c0_i32, %c0_i32_0 : i32, i32
  }
  func.func @transform_8(%arg0: i32) -> (i32, i32) {
    %c0_i32 = arith.constant 0 : i32
    %c0_i32_0 = arith.constant 0 : i32
    %c0_i32_1 = arith.constant 0 : i32
    return %c0_i32, %c0_i32_0 : i32, i32
  }
}

</mosaic_0001>

<bundles_post_ra>
// kernel: tpu_custom_call.1
= control target key start
LH: loop header
LB: loop body
LE: loop exit
PB: predicated region body
PF: predicated region fallthrough
CT: control target
= control target key end

     0   :  { %14 = vsyncpa [#allocation4], 0  ;;  %s2460_s0 = inlined_call_operand.vmem [shape: bf16[128,8], index: 0, kind: input, shape index: {}]   ;;  %s2461_s1 = inlined_call_operand.vmem [shape: s32[16,1], index: 1, kind: input, shape index: {}]   ;;  %s2462_s2 = inlined_call_operand.vmem [shape: bf16[8,512], index: 2, kind: input, shape index: {}]   ;;  %s2463_s3 = inlined_call_operand.hbm [shape: bf16[128,512], index: 3, kind: input, shape index: {}]   ;;  %s2464_s4 = inlined_call_operand.vmem [shape: f32[1,512], index: 4, kind: input, shape index: {}]   ;;  %s2465_s5 = inlined_call_operand.vmem [shape: f32[16,128], index: 5, kind: input, shape index: {}]   ;;  %s2466_s6 = inlined_call_operand.vmem [shape: f32[16,128], index: 6, kind: input, shape index: {}]   ;;  %s2467_s7 = inlined_call_operand.hbm [shape: f32[16,128], index: 7, kind: output, shape index: {0}]   ;;  %s2468_s8 = inlined_call_operand.hbm [shape: f32[16,128], index: 8, kind: output, shape index: {1}]  }
   0x1   :  { %15 = vsyncpa [#allocation5], 0 }
   0x2   :  { %16 = vsyncpa [#allocation8], 0  ;;  %s1929_s27 = smov 0  }
   0x3 LB: > { %s1935_s28 = sadd.s32 4294967295, %s1874_s27   ;;  %p1541_p0 = scmp.ge.s32.totalorder %s1874_s27, 1  ;;  %s1874_s27 = sphi %s1929_s27, %s22_s27  }
   0x4   : > { %p221_p1 = scmp.lt.s32.totalorder %s1874_s27, 3  ;;  %s1876_s29 = smov [#allocation3]  }
   0x5   : > { %s239_s30 = sshll.u32 %s1876_s29, 4  ;;  %p1622_p4 = scmp.eq.s32.totalorder %s1935_s28, 0  ;;  %s240_s30 = int_to_ptr.vmem [resolvable:$true] %s239_s30 }
   0x6   : > { %p1940_p3 = pnand %p1541_p0, %p221_p1  ;;  %s1793_s10 = scalar_lea.vmem %s240_s30, 4096 }
   0x7   : > { %p1794_p8 = scmp.ne.s32.totalorder %s240_s30, %s1793_s10  ;;  %p1801_p11 = scmp.lt.s32.totalorder %s240_s30, %s240_s30 }
   0x8   : > { %p1618_p5 = pneg %p1940_p3  ;;  %p1802_p12 = scmp.lt.s32.totalorder %s1793_s10, %s1793_s10 }
   0xa   : > { %p1619_p6 = pnand %p1622_p4, %p1618_p5  ;;  %p1803_p13 = por %p1802_p12, %p1801_p11 }
   0xc   : > { %p1784_p7 = pneg %p1619_p6 }
   0xe   : > { %p1796_p9 = pnand %p1794_p8, %p1784_p7 }
  0x10   : > { %p1797_p10 = pneg %p1796_p9 }
  0x12   : > { %p1804_p2 = pnand %p1803_p13, %p1797_p10 }
  0x14   : > { %1807 = shalt.err (!%p1804_p2)
}
  0x15   : > { %s1877_s11 = smov 256   ;;  %s1878_s12 = smov 16  }
  0x16   : > { %1621 = dma.hbm_to_vmem [thread:$0]  (!%p1619_p6), %s2463_s3, 4096, %s240_s30, [#allocation4], %s1877_s11, %s1877_s11, %s1878_s12  }
  0x17   : > { %273 = sbr.rel (%p1940_p3) target bundleno = 1059 (0x423), region = 48 }
  0x1c   : > { %1861 = dma.done.wait (%p1622_p4), [#allocation4], 4096  }
  0x1d   : > { %1863 = vsyncadd (%p1622_p4), [#allocation4], 4294963200  ;;  %s1546_s15 = sshll.u32 %s1935_s28, 3  ;;  %p2472_p1 = scmp.ne.s32.totalorder %s1935_s28, 0 }
  0x1e   : > { %p303_p0 = scmp.lt.s32.totalorder %s1546_s15, 15 }
  0x1f   : > { %312 = sbr.rel (%p2472_p1) target bundleno = 39 (0x27), region = 56 }
  0x20   : > { %s2519_s15 = smov (!%p303_p0, %s1546_s15), 15 }
  0x21   : > { %s1547_s16 = sshll.u32 %s2519_s15, 2 }
  0x22   : > { %s1962_s19 = scalar_lea.vmem %s2460_s0, %s1547_s16 }
  0x24   : > { %v313_v0 = vld [vmem:[%s2465_s5] sm:$0xff]  ;;  %v314_v1 = vld [vmem:[%s2465_s5 + $0x8] sm:$0xff] }
  0x25   : > { %v317_v2 = vld [vmem:[%s2466_s6] sm:$0xff]  ;;  %315 = vst [vmem:[#allocation6] sm:$0xff] %v313_v0  ;;  %316 = vst [vmem:[#allocation6 + $0x8] sm:$0xff] %v314_v1  ;;  %v318_v3 = vld [vmem:[%s2466_s6 + $0x8] sm:$0xff] }
  0x26   : > { %319 = vst [vmem:[#allocation7] sm:$0xff] %v317_v2  ;;  %320 = vst [vmem:[#allocation7 + $0x8] sm:$0xff] %v318_v3 }
  0x27 PF: > { %v329_v4 = vld [vmem:[%s2462_s2] sm:$0xff]  ;;  %vm396_vm0 = vcmask 1043456   ;;  %v330_v5 = vld [vmem:[%s2462_s2 + $0x8] sm:$0xff]  ;;  %v2469_v10 = vmov 0   ;;  %vm383_vm1 = vcmask 64512   ;;  %v1676_v33 = vld [vmem:[%s1962_s19 + $0x10] sm:$0xff]   ;;  %v333_v2 = vlaneseq }
  0x28   : > { %v1554_v6 = vcombine.high %v329_v4, %v329_v4  ;;  %v1556_v7 = vcombine.high %v330_v5, %v330_v5  ;;  %v1553_v8 = vcombine.low %v329_v4, %v329_v4  ;;  %v1555_v9 = vcombine.low %v330_v5, %v330_v5  ;;  %441 = vmatprep.mubr.bf16.mxu0 %v2469_v10  ;;  %v1650_v11 = vld [vmem:[%s1962_s19] sm:$0xff]   ;;  %v1990_v15 = vld [vmem:[#allocation3 + $0xec] ss:$16 sps:$4 sm:$0xff]   ;;  %v1994_v17 = vld [vmem:[#allocation3 + $0xe8] ss:$16 sps:$4 sm:$0xff]   ;;  %s2062_s12 = sshll.u32 %s1935_s28, 2 }
  0x29   : > { %514 = vmatprep.mubr.bf16.mxu1 %v2469_v10  ;;  %v1987_v12 = vld [vmem:[#allocation3 + $0xe4] ss:$16 sps:$4 sm:$0xff]   ;;  %1644 = vset.pattern.permute.xlu0 %v2469_v10  ;;  %v1992_v16 = vld [vmem:[#allocation3 + $0xe0] ss:$16 sps:$4 sm:$0xff]   ;;  %v2000_v19 = vld [vmem:[#allocation3 + $0xcc] ss:$16 sps:$4 sm:$0xff]   ;;  %v928_v40 = vstv %s2062_s12 }
  0x2a   : > { %1557 = vmatprep.subr.msk.bf16.mxu0 %vm396_vm0, %v1554_v6  ;;  %1562 = vmatprep.subr.msk.bf16.mxu1 %vm396_vm0, %v1556_v7  ;;  %v398_v13 = vsel %vm396_vm0, %v1553_v8, 0  ;;  %v404_v14 = vsel %vm396_vm0, %v1555_v9, 0  ;;  %v1998_v18 = vld [vmem:[#allocation3 + $0xc4] ss:$16 sps:$4 sm:$0xff]   ;;  %v2002_v20 = vld [vmem:[#allocation3 + $0xc0] ss:$16 sps:$4 sm:$0xff]  }
  0x2b   : > { %424 = vmatpush1.bf16.msra.mxu0 %v398_v13  ;;  %497 = vmatpush1.bf16.msra.mxu1 %v404_v14  ;;  %v2007_v21 = vld [vmem:[#allocation3 + $0xc8] ss:$16 sps:$4 sm:$0xff]   ;;  %v2011_v22 = vld [vmem:[#allocation3 + $0xa4] ss:$16 sps:$4 sm:$0xff]   ;;  %v2015_v23 = vld [vmem:[#allocation3 + $0xac] ss:$16 sps:$4 sm:$0xff]  }
  0x2c   : > { %798 = vmatprep.subr.bf16.mxu0 %v1987_v12  ;;  %841 = vmatprep.subr.bf16.mxu1 %v1990_v15  ;;  %v1663_v24 = vld [vmem:[%s1962_s19 + $0x8] sm:$0xff]   ;;  %v2020_v25 = vld [vmem:[#allocation3 + $0xa0] ss:$16 sps:$4 sm:$0xff]   ;;  %v2026_v27 = vld [vmem:[#allocation3 + $0x84] ss:$16 sps:$4 sm:$0xff]   ;;  %s1263_s17 = sadd.s32 2, %s2062_s12 }
  0x2d   : > { %1645 = vset.pattern.permute.xlu1 %v2469_v10  ;;  %v2024_v26 = vld [vmem:[#allocation3 + $0xa8] ss:$16 sps:$4 sm:$0xff]   ;;  %v2030_v28 = vld [vmem:[#allocation3 + $0x8c] ss:$16 sps:$4 sm:$0xff]   ;;  %v2036_v29 = vld [vmem:[#allocation3 + $0x80] ss:$16 sps:$4 sm:$0xff]   ;;  %v2112_v52 = vstv %s1263_s17 }
  0x2e   : > { %1558 = vmatmul.mubr.msk.bf16.vlgmr.msra.gmra.mxu0 %vm383_vm1, %v1650_v11  ;;  %1563 = vmatmul.mubr.msk.bf16.vlgmr.msra.gmra.mxu1 %vm383_vm1, %v1650_v11  ;;  %v2038_v30 = vld [vmem:[#allocation3 + $0x88] ss:$16 sps:$4 sm:$0xff]   ;;  %v2040_v31 = vld [vmem:[#allocation3 + $0x64] ss:$16 sps:$4 sm:$0xff]   ;;  %v2044_v32 = vld [vmem:[#allocation3 + $0x6c] ss:$16 sps:$4 sm:$0xff]  }
  0x2f   : > { %799 = vmatpush1.bf16.msra.mxu0 %v1992_v16  ;;  %842 = vmatpush1.bf16.msra.mxu1 %v1994_v17  ;;  %v2049_v34 = vld [vmem:[#allocation3 + $0x60] ss:$16 sps:$4 sm:$0xff]   ;;  %v2051_v35 = vld [vmem:[#allocation3 + $0x68] ss:$16 sps:$4 sm:$0xff]   ;;  %v2055_v36 = vld [vmem:[#allocation3 + $0x44] ss:$16 sps:$4 sm:$0xff]  }
  0x30   : > { %800 = vmatprep.subr.bf16.mxu0 %v1998_v18  ;;  %843 = vmatprep.subr.bf16.mxu1 %v2000_v19  ;;  %v2059_v37 = vld [vmem:[#allocation3 + $0x4c] ss:$16 sps:$4 sm:$0xff]   ;;  %v2066_v38 = vld [vmem:[#allocation3 + $0x40] ss:$16 sps:$4 sm:$0xff]   ;;  %v2070_v39 = vld [vmem:[#allocation3 + $0x48] ss:$16 sps:$4 sm:$0xff]  }
  0x31   : > { %451 = vmatprep.mubr.bf16.mxu0 %v2469_v10  ;;  %524 = vmatprep.mubr.bf16.mxu1 %v2469_v10  ;;  %v2075_v41 = vld [vmem:[#allocation3 + $0x24] ss:$16 sps:$4 sm:$0xff]   ;;  %v2077_v42 = vld [vmem:[#allocation3 + $0x2c] ss:$16 sps:$4 sm:$0xff]   ;;  %v2095_v46 = vld [vmem:[#allocation3 + $0x20] ss:$16 sps:$4 sm:$0xff]  }
  0x32   : > { %v2084_v43 = vld [vmem:[%s2461_s1] sm:$0xff]  ;;  %v1689_v44 = vld [vmem:[%s1962_s19 + $0x18] sm:$0xff]   ;;  %v2091_v45 = vld [vmem:[%s2461_s1 + $0x8] sm:$0xff]  ;;  %s1431_s18 = sadd.s32 3, %s2062_s12  ;;  %s1095_s19 = sadd.s32 1, %s2062_s12  ;;  %v334_v3 = vshrl.u32 %v333_v2, 7 }
  0x33   : > { %801 = vmatpush1.bf16.msra.mxu0 %v2002_v20  ;;  %844 = vmatpush1.bf16.msra.mxu1 %v2007_v21  ;;  %vm929_vm2 = vcmp.lt.s32.totalorder %v928_v40, %v2084_v43  ;;  %v2097_v47 = vld [vmem:[#allocation3 + $0x28] ss:$16 sps:$4 sm:$0xff]   ;;  %v2103_v49 = vld [vmem:[#allocation3 + $0x4] ss:$16 sps:$4 sm:$0xff]   ;;  %v2105_v50 = vld [vmem:[#allocation3 + $0xc] ss:$16 sps:$4 sm:$0xff]   ;;  %vm930_vm3 = vcmp.lt.s32.totalorder %v928_v40, %v2091_v45  ;;  %vm1265_vm4 = vcmp.lt.s32.totalorder %v2112_v52, %v2084_v43  ;;  %v1432_v58 = vstv %s1431_s18 }
  0x34   : > { %802 = vmatprep.subr.bf16.mxu0 %v2011_v22  ;;  %845 = vmatprep.subr.bf16.mxu1 %v2015_v23  ;;  %v931_v48 = vsel %vm929_vm2, 1, %v2469_v10  ;;  %v2110_v51 = vld [vmem:[#allocation3] ss:$16 sps:$4 sm:$0xff]   ;;  %v2116_v53 = vld [vmem:[#allocation3 + $0x8] ss:$16 sps:$4 sm:$0xff]   ;;  %v932_v56 = vsel %vm930_vm3, 1, %v2469_v10  ;;  %vm1433_vm5 = vcmp.lt.s32.totalorder %v1432_v58, %v2084_v43  ;;  %v1096_v61 = vstv %s1095_s19 }
  0x35   : > { %934 = vperm.xlu0 %1644, %v931_v48   ;;  %v2118_v54 = vld [vmem:[#allocation6] sm:$0xff]  ;;  %v2120_v55 = vld [vmem:[#allocation6 + $0x8] sm:$0xff]  ;;  %v1267_v59 = vsel %vm1265_vm4, 1, %v2469_v10  ;;  %v1435_v60 = vsel %vm1433_vm5, 1, %v2469_v10  ;;  %vm1097_vm6 = vcmp.lt.s32.totalorder %v1096_v61, %v2084_v43  ;;  %vm1098_vm7 = vcmp.lt.s32.totalorder %v1096_v61, %v2091_v45  ;;  %s1880_s22 = smov [#allocation7]   ;;  %p1624_p2 = scmp.eq.s32.totalorder %s1935_s28, 1 }
  0x36   : > { %1559 = vmatmul.mubr.msk.bf16.gmra.mxu0 %vm383_vm1, %v1663_v24  ;;  %1564 = vmatmul.mubr.msk.bf16.gmra.mxu1 %vm383_vm1, %v1663_v24  ;;  %v637_v57 = vpack.c.bf16 %v2120_v55, %v2118_v54  ;;  %v1099_v62 = vsel %vm1097_vm6, 1, %v2469_v10  ;;  %v1100_v63 = vsel %vm1098_vm7, 1, %v2469_v10  ;;  %vm1266_vm8 = vcmp.lt.s32.totalorder %v2112_v52, %v2091_v45  ;;  %v331_v11 = vld [vmem:[%s2464_s4] sm:$0xf]  ;;  %s1472_s23 = sshll.u32 %s1880_s22, 4  ;;  %s1473_s23 = int_to_ptr.vmem [resolvable:$true] %s1472_s23 }
  0x37   : > { %803 = vmatpush1.bf16.msra.mxu0 %v2020_v25  ;;  %846 = vmatpush1.bf16.msra.mxu1 %v2024_v26  ;;  %v1268_v0 = vsel %vm1266_vm8, 1, %v2469_v10  ;;  %vm1434_vm9 = vcmp.lt.s32.totalorder %v1432_v58, %v2091_v45  ;;  %v335_v8 = vsub.s32 0, %v334_v3  ;;  %v343_v9 = vsub.s32 2, %v334_v3  ;;  %s1808_s24 = scalar_lea.vmem %s1473_s23, 256  ;;  %p1815_p6 = scmp.lt.s32.totalorder %s1473_s23, %s1473_s23 }
  0x38   : > { %804 = vmatprep.subr.bf16.mxu0 %v2026_v27  ;;  %847 = vmatprep.subr.bf16.mxu1 %v2030_v28  ;;  %v1436_v1 = vsel %vm1434_vm9, 1, %v2469_v10  ;;  %v339_v24 = vsub.s32 1, %v334_v3  ;;  %p1809_p3 = scmp.ne.s32.totalorder %s1473_s23, %s1808_s24  ;;  %p1816_p7 = scmp.lt.s32.totalorder %s1808_s24, %s1808_s24 }
  0x39   : > { %461 = vmatprep.mubr.bf16.mxu0 %v2469_v10  ;;  %534 = vmatprep.mubr.bf16.mxu1 %v2469_v10  ;;  %v2202_v45 = vrot.slane %v331_v11, %v343_v9 }
  0x3a   : > { %937 = vperm.xlu0 %1644, %v932_v56   ;;  %1102 = vperm.xlu1 %1645, %v1099_v62   ;;  %v340_v56 = vrot.slane %v331_v11, %v339_v24  ;;  %p1810_p4 = pnand %p1809_p3, %p1624_p2  ;;  %p1817_p8 = por %p1816_p7, %p1815_p6 }
  0x3b   : > { %805 = vmatpush1.bf16.msra.mxu0 %v2036_v29  ;;  %848 = vmatpush1.bf16.msra.mxu1 %v2038_v30 }
  0x3c   : > { %806 = vmatprep.subr.bf16.mxu0 %v2040_v31  ;;  %849 = vmatprep.subr.bf16.mxu1 %v2044_v32  ;;  %p1811_p5 = pneg %p1810_p4 }
  0x3e   : > { %1560 = vmatmul.mubr.msk.bf16.gmra.mxu0 %vm383_vm1, %v1676_v33  ;;  %1565 = vmatmul.mubr.msk.bf16.gmra.mxu1 %vm383_vm1, %v1676_v33  ;;  %v347_v33 = vsub.s32 3, %v334_v3  ;;  %p1818_p9 = pnand %p1817_p8, %p1811_p5 }
  0x3f   : > { %807 = vmatpush1.bf16.msra.mxu0 %v2049_v34  ;;  %850 = vmatpush1.bf16.msra.mxu1 %v2051_v35 }
  0x40   : > { %808 = vmatprep.subr.bf16.mxu0 %v2055_v36  ;;  %851 = vmatprep.subr.bf16.mxu1 %v2059_v37 }
  0x41   : > { %471 = vmatprep.mubr.bf16.mxu0 %v2469_v10  ;;  %544 = vmatprep.mubr.bf16.mxu1 %v2469_v10 }
  0x42   : > { %1270 = vperm.xlu0 %1644, %v1267_v59   ;;  %1105 = vperm.xlu1 %1645, %v1100_v63  }
  0x43   : > { %809 = vmatpush1.bf16.msra.mxu0 %v2066_v38  ;;  %852 = vmatpush1.bf16.msra.mxu1 %v2070_v39 }
  0x44   : > { %810 = vmatprep.subr.bf16.mxu0 %v2075_v41  ;;  %853 = vmatprep.subr.bf16.mxu1 %v2077_v42 }
  0x46   : > { %1561 = vmatmul.mubr.msk.bf16.gmra.mxu0 %vm383_vm1, %v1689_v44  ;;  %1566 = vmatmul.mubr.msk.bf16.gmra.mxu1 %vm383_vm1, %v1689_v44  ;;  %v336_v44 = vrot.slane %v331_v11, %v335_v8 }
  0x47   : > { %811 = vmatpush1.bf16.msra.mxu0 %v2095_v46  ;;  %854 = vmatpush1.bf16.msra.mxu1 %v2097_v47 }
  0x48   : > { %812 = vmatprep.subr.bf16.mxu0 %v2103_v49  ;;  %855 = vmatprep.subr.bf16.mxu1 %v2105_v50 }
  0x49   : > { %830 = vmatprep.mubr.bf16.mxu0 %v2469_v10  ;;  %873 = vmatprep.mubr.bf16.mxu1 %v2469_v10 }
  0x4a   : > { %1438 = vperm.xlu0 %1644, %v1435_v60   ;;  %1273 = vperm.xlu1 %1645, %v1268_v0  }
  0x4b   : > { %813 = vmatpush1.bf16.msra.mxu0 %v2110_v51  ;;  %856 = vmatpush1.bf16.msra.mxu1 %v2116_v53 }
  0x4c   : > { %965 = vmatprep.subr.bf16.mxu0 %v1987_v12  ;;  %1008 = vmatprep.subr.bf16.mxu1 %v1990_v15 }
  0x4e   : > { %831 = vmatmul.mubr.bf16.vlgmr.msra.gmra.mxu0 %v637_v57  ;;  %874 = vmatmul.mubr.bf16.vlgmr.msra.gmra.mxu1 %v637_v57  ;;  %v2204_v57 = vrot.slane %v331_v11, %v347_v33 }
  0x4f   : > { %966 = vmatpush1.bf16.msra.mxu0 %v1992_v16  ;;  %1009 = vmatpush1.bf16.msra.mxu1 %v1994_v17 }
  0x50   : > { %967 = vmatprep.subr.bf16.mxu0 %v1998_v18  ;;  %1010 = vmatprep.subr.bf16.mxu1 %v2000_v19 }
  0x51   : > { %997 = vmatprep.mubr.bf16.mxu0 %v2469_v10  ;;  %1040 = vmatprep.mubr.bf16.mxu1 %v2469_v10 }
  0x52   : > { %1441 = vperm.xlu1 %1645, %v1436_v1  }
  0x53   : > { %968 = vmatpush1.bf16.msra.mxu0 %v2002_v20  ;;  %1011 = vmatpush1.bf16.msra.mxu1 %v2007_v21 }
  0x54   : > { %969 = vmatprep.subr.bf16.mxu0 %v2011_v22  ;;  %1012 = vmatprep.subr.bf16.mxu1 %v2015_v23 }
  0x57   : > { %970 = vmatpush1.bf16.msra.mxu0 %v2020_v25  ;;  %1013 = vmatpush1.bf16.msra.mxu1 %v2024_v26 }
  0x58   : > { %971 = vmatprep.subr.bf16.mxu0 %v2026_v27  ;;  %1014 = vmatprep.subr.bf16.mxu1 %v2030_v28 }
  0x5b   : > { %972 = vmatpush1.bf16.msra.mxu0 %v2036_v29  ;;  %1015 = vmatpush1.bf16.msra.mxu1 %v2038_v30 }
  0x5c   : > { %973 = vmatprep.subr.bf16.mxu0 %v2040_v31  ;;  %1016 = vmatprep.subr.bf16.mxu1 %v2044_v32 }
  0x5f   : > { %974 = vmatpush1.bf16.msra.mxu0 %v2049_v34  ;;  %1017 = vmatpush1.bf16.msra.mxu1 %v2051_v35 }
  0x60   : > { %975 = vmatprep.subr.bf16.mxu0 %v2055_v36  ;;  %1018 = vmatprep.subr.bf16.mxu1 %v2059_v37 }
  0x63   : > { %976 = vmatpush1.bf16.msra.mxu0 %v2066_v38  ;;  %1019 = vmatpush1.bf16.msra.mxu1 %v2070_v39 }
  0x64   : > { %977 = vmatprep.subr.bf16.mxu0 %v2075_v41  ;;  %1020 = vmatprep.subr.bf16.mxu1 %v2077_v42 }
  0x67   : > { %978 = vmatpush1.bf16.msra.mxu0 %v2095_v46  ;;  %1021 = vmatpush1.bf16.msra.mxu1 %v2097_v47 }
  0x68   : > { %979 = vmatprep.subr.bf16.mxu0 %v2103_v49  ;;  %1022 = vmatprep.subr.bf16.mxu1 %v2105_v50 }
  0x6b   : > { %980 = vmatpush1.bf16.msra.mxu0 %v2110_v51  ;;  %1023 = vmatpush1.bf16.msra.mxu1 %v2116_v53 }
  0x6c   : > { %1133 = vmatprep.subr.bf16.mxu0 %v1987_v12  ;;  %1176 = vmatprep.subr.bf16.mxu1 %v1990_v15 }
  0xee   : > { %v2183_v4 = vpop.f32.mrf.mxu0  ;;  %v2185_v5 = vpop.f32.mrf.mxu1 }
  0xf0   : > { %v2187_v6 = vpop.f32.mrf.mxu0  ;;  %v2189_v7 = vpop.f32.mrf.mxu1 }
  0xf2   : > { %v2194_v13 = vpop.f32.mrf.mxu0  ;;  %v2196_v14 = vpop.f32.mrf.mxu1 }
  0xf4   : > { %v2198_v40 = vpop.f32.mrf.mxu0  ;;  %v2200_v43 = vpop.f32.mrf.mxu1 }
  0xf6   : > { %v453_v48 = vpop.f32.mrf.mxu0  ;;  %v526_v52 = vpop.f32.mrf.mxu1 }
  0xf7   : > { %v2206_v58 = vadd.f32 %v453_v48, %v336_v44  ;;  %v2209_v59 = vadd.f32 %v526_v52, %v2202_v45 }
  0xf8   : > { %v455_v60 = vpop.f32.mrf.mxu0  ;;  %v528_v61 = vpop.f32.mrf.mxu1 }
  0xf9   : > { %2473 = vst [vmem:[#allocation12_spill] sm:$0xff] %v2209_v59  ;;  %v2211_v62 = vadd.f32 %v455_v60, %v340_v56  ;;  %v2214_v63 = vadd.f32 %v528_v61, %v2204_v57 }
  0xfa   : > { %v457_v0 = vpop.f32.mrf.mxu0  ;;  %v530_v1 = vpop.f32.mrf.mxu1 }
  0xfb   : > { %2474 = vst [vmem:[#allocation13_spill] sm:$0xff] %v2214_v63  ;;  %v2216_v2 = vadd.f32 %v457_v0, %v336_v44  ;;  %v2219_v3 = vadd.f32 %v530_v1, %v2202_v45 }
  0xfc   : > { %v459_v8 = vpop.f32.mrf.mxu0  ;;  %v532_v9 = vpop.f32.mrf.mxu1 }
  0xfd   : > { %2475 = vst [vmem:[#allocation14_spill] sm:$0xff] %v2216_v2  ;;  %2476 = vst [vmem:[#allocation15_spill] sm:$0xff] %v2219_v3  ;;  %v2221_v11 = vadd.f32 %v459_v8, %v340_v56  ;;  %v2224_v24 = vadd.f32 %v532_v9, %v2204_v57 }
  0xfe   : > { %v463_v33 = vpop.f32.mrf.mxu0  ;;  %v536_v48 = vpop.f32.mrf.mxu1 }
  0xff   : > { %2477 = vst [vmem:[#allocation16_spill] sm:$0xff] %v2221_v11  ;;  %2478 = vst [vmem:[#allocation17_spill] sm:$0xff] %v2224_v24  ;;  %v2226_v52 = vadd.f32 %v463_v33, %v336_v44  ;;  %v2229_v60 = vadd.f32 %v536_v48, %v2202_v45 }
 0x100   : > { %v465_v61 = vpop.f32.mrf.mxu0  ;;  %v538_v0 = vpop.f32.mrf.mxu1 }
 0x101   : > { %2479 = vst [vmem:[#allocation18_spill] sm:$0xff] %v2226_v52  ;;  %2480 = vst [vmem:[#allocation19_spill] sm:$0xff] %v2229_v60  ;;  %v2231_v10 = vadd.f32 %v465_v61, %v340_v56  ;;  %v2234_v1 = vadd.f32 %v538_v0, %v2204_v57 }
 0x102   : > { %v467_v63 = vpop.f32.mrf.mxu0  ;;  %v540_v8 = vpop.f32.mrf.mxu1 }
 0x103   : > { %2481 = vst [vmem:[#allocation20_spill] sm:$0xff] %v2231_v10  ;;  %2482 = vst [vmem:[#allocation21_spill] sm:$0xff] %v2234_v1  ;;  %v2236_v3 = vadd.f32 %v467_v63, %v336_v44  ;;  %v2239_v9 = vadd.f32 %v540_v8, %v2202_v45 }
 0x104   : > { %v469_v24 = vpop.f32.mrf.mxu0  ;;  %v542_v33 = vpop.f32.mrf.mxu1 }
 0x105   : > { %2483 = vst [vmem:[#allocation22_spill] sm:$0xff] %v2236_v3  ;;  %2484 = vst [vmem:[#allocation23_spill] sm:$0xff] %v2239_v9  ;;  %v2241_v52 = vadd.f32 %v469_v24, %v340_v56  ;;  %v2244_v48 = vadd.f32 %v542_v33, %v2204_v57 }
 0x106   : > { %v473_v60 = vpop.f32.mrf.mxu0  ;;  %v546_v61 = vpop.f32.mrf.mxu1 }
 0x107   : > { %2485 = vst [vmem:[#allocation24_spill] sm:$0xff] %v2241_v52  ;;  %2486 = vst [vmem:[#allocation25_spill] sm:$0xff] %v2244_v48  ;;  %v2246_v10 = vadd.f32 %v473_v60, %v336_v44  ;;  %v2249_v0 = vadd.f32 %v546_v61, %v2202_v45 }
 0x108   : > { %v475_v1 = vpop.f32.mrf.mxu0  ;;  %v548_v63 = vpop.f32.mrf.mxu1 }
 0x109   : > { %2487 = vst [vmem:[#allocation26_spill] sm:$0xff] %v2246_v10  ;;  %2488 = vst [vmem:[#allocation27_spill] sm:$0xff] %v2249_v0  ;;  %v2251_v3 = vadd.f32 %v475_v1, %v340_v56  ;;  %v2254_v8 = vadd.f32 %v548_v63, %v2204_v57  ;;  %v444_v10 = vadd.f32 %v2183_v4, %v336_v44 }
 0x10a   : > { %v477_v9 = vpop.f32.mrf.mxu0  ;;  %v550_v24 = vpop.f32.mrf.mxu1  ;;  %v446_v63 = vadd.f32 %v2187_v6, %v340_v56 }
 0x10b   : > { %2489 = vst [vmem:[#allocation28_spill] sm:$0xff] %v2251_v3  ;;  %2490 = vst [vmem:[#allocation29_spill] sm:$0xff] %v2254_v8  ;;  %v2256_v52 = vadd.f32 %v477_v9, %v336_v44  ;;  %v2259_v33 = vadd.f32 %v550_v24, %v2202_v45  ;;  %v448_v9 = vadd.f32 %v2194_v13, %v336_v44 }
 0x10c   : > { %v479_v48 = vpop.f32.mrf.mxu0  ;;  %v552_v60 = vpop.f32.mrf.mxu1  ;;  %v521_v13 = vadd.f32 %v2196_v14, %v2202_v45 }
 0x10d   : > { %2491 = vst [vmem:[#allocation30_spill] sm:$0xff] %v2256_v52  ;;  %2492 = vst [vmem:[#allocation31_spill] sm:$0xff] %v2259_v33  ;;  %v2262_v61 = vadd.f32 %v479_v48, %v340_v56  ;;  %v2265_v0 = vadd.f32 %v552_v60, %v2204_v57  ;;  %v517_v33 = vadd.f32 %v2185_v5, %v2202_v45 }
 0x10e   : > { %v832_v1 = vpop.f32.mrf.mxu0  ;;  %v875_v3 = vpop.f32.mrf.mxu1  ;;  %v450_v48 = vadd.f32 %v2198_v40, %v340_v56  ;;  %v519_v40 = vadd.f32 %v2189_v7, %v2204_v57 }
 0x10f   : > { %2493 = vst [vmem:[#allocation32_spill] sm:$0xff] %v2262_v61  ;;  %2494 = vst [vmem:[#allocation33_spill] sm:$0xff] %v2265_v0  ;;  %v884_v8 = vadd.f32 %v832_v1, %v444_v10  ;;  %v886_v61 = vadd.f32 %v875_v3, %v517_v33  ;;  %v523_v3 = vadd.f32 %v2200_v43, %v2204_v57 }
 0x110   : > { %v834_v11 = vpop.f32.mrf.mxu0  ;;  %v877_v2 = vpop.f32.mrf.mxu1 }
 0x111   : > { %v892_v52 = vmul.f32 0.5, %v884_v8  ;;  %v885_v24 = vadd.f32 %v834_v11, %v446_v63  ;;  %v887_v11 = vadd.f32 %v877_v2, %v519_v40 }
 0x112   : > { %v836_v4 = vpop.f32.mrf.mxu0  ;;  %v879_v1 = vpop.f32.mrf.mxu1 }
 0x113   : > { %1702 = vtanh.f32 %v892_v52  ;;  %v900_v60 = vmul.f32 0.5, %v885_v24  ;;  %v888_v0 = vadd.f32 %v836_v4, %v448_v9  ;;  %v890_v5 = vadd.f32 %v879_v1, %v521_v13  ;;  %v624_v24 = vld [vmem:[#allocation7] sm:$0xff] }
 0x114   : > { %v838_v59 = vpop.f32.mrf.mxu0  ;;  %v881_v56 = vpop.f32.mrf.mxu1  ;;  %v910_v8 = vmul.f32 0.5, %v887_v11 }
 0x115   : > { %1704 = vtanh.f32 %v900_v60  ;;  %v893_v6 = vmul.f32 0.5, %v888_v0  ;;  %v889_v10 = vadd.f32 %v838_v59, %v450_v48  ;;  %v891_v52 = vadd.f32 %v881_v56, %v523_v3 }
 0x117   : > { %1706 = vtanh.f32 %v893_v6  ;;  %v901_v44 = vmul.f32 0.5, %v889_v10  ;;  %v911_v14 = vmul.f32 0.5, %v891_v52  ;;  %v625_v10 = vld [vmem:[#allocation7 + $0x8] sm:$0xff] }
 0x118   : > { %1708 = vtanh.f32 %v886_v61  ;;  %v935_v61 = vpop.permute.xlu0 %934 }
 0x119   : > { %1710 = vtanh.f32 %v901_v44  ;;  %vm939_vm10 = vcmp.eq.s32.totalorder %v935_v61, 1 }
 0x11a   : > { %1712 = vtanh.f32 %v890_v5 }
 0x11b   : > { %1714 = vtanh.f32 %v910_v8 }
 0x11c   : > { %1716 = vtanh.f32 %v911_v14  ;;  %v938_v44 = vpop.permute.xlu0 %937 }
 0x11d   : > { %vm940_vm11 = vcmp.eq.s32.totalorder %v938_v44, 1 }
 0x120   : > { %v1703_v59 = vpop.eup %1702 }
 0x121   : > { %v896_v0 = vmul.f32 0.5, %v1703_v59 }
 0x122   : > { %v1705_v33 = vpop.eup %1704 }
 0x123   : > { %v898_v45 = vadd.f32 0.5, %v896_v0  ;;  %v904_v63 = vmul.f32 0.5, %v1705_v33 }
 0x124   : > { %v1707_v9 = vpop.eup %1706 }
 0x125   : > { %v1709_v4 = vpop.eup %1708  ;;  %v906_v48 = vadd.f32 0.5, %v904_v63  ;;  %v897_v7 = vmul.f32 0.5, %v1707_v9 }
 0x126   : > { %v1711_v60 = vpop.eup %1710  ;;  %v920_v6 = vmul.f32 %v1709_v4, %v898_v45 }
 0x127   : > { %v899_v43 = vadd.f32 0.5, %v897_v7  ;;  %v905_v57 = vmul.f32 0.5, %v1711_v60  ;;  %v918_v2 = vmul.f32 %v906_v48, %v624_v24  ;;  %v1713_v5 = vpop.eup %1712 }
 0x128   : > { %v1715_v59 = vpop.eup %1714 }
 0x129   : > { %v907_v1 = vadd.f32 0.5, %v905_v57  ;;  %v922_v13 = vadd.f32 %v920_v6, %v918_v2  ;;  %v921_v3 = vmul.f32 %v1713_v5, %v899_v43  ;;  %v1717_v0 = vpop.eup %1716  ;;  %v914_v8 = vmul.f32 0.5, %v1715_v59  ;;  %v2498_v59 = vld [vmem:[#allocation16_spill] sm:$0xff] }
 0x12a   : > { %v915_v33 = vmul.f32 0.5, %v1717_v0  ;;  %v2495_v43 = vmov 0  }
 0x12b   : > { %1718 = vtanh.f32 %v922_v13  ;;  %v2279_v40 = vsel %vm939_vm10, %v922_v13, %v624_v24  ;;  %v919_v56 = vmul.f32 %v907_v1, %v625_v10  ;;  %v916_v45 = vadd.f32 0.5, %v914_v8  ;;  %v2496_v1 = vld [vmem:[#allocation12_spill] sm:$0xff] }
 0x12c   : > { %v917_v63 = vadd.f32 0.5, %v915_v33 }
 0x12d   : > { %v923_v11 = vadd.f32 %v921_v3, %v919_v56  ;;  %v2497_v56 = vld [vmem:[#allocation14_spill] sm:$0xff] }
 0x12f   : > { %1720 = vtanh.f32 %v923_v11  ;;  %v2281_v52 = vsel %vm940_vm11, %v923_v11, %v625_v10 }
 0x138   : > { %v1719_v14 = vpop.eup %1718 }
 0x139   : > { %v926_v9 = vmul.f32 %v1719_v14, %v916_v45 }
 0x13b   : > { %v2285_v24 = vsel %vm939_vm10, %v926_v9, %v2118_v54  ;;  %v2501_v9 = vld [vmem:[#allocation17_spill] sm:$0xff] }
 0x13c   : > { %v1721_v4 = vpop.eup %1720 }
 0x13d   : > { %v927_v48 = vmul.f32 %v1721_v4, %v917_v63 }
 0x13f   : > { %v2288_v7 = vsel %vm940_vm11, %v927_v48, %v2120_v55 }
 0x140   : > { %v964_v60 = vpack.c.bf16 %v2288_v7, %v2285_v24 }
 0x142   : > { %998 = vmatmul.mubr.bf16.vlgmr.msra.gmra.mxu0 %v964_v60  ;;  %1041 = vmatmul.mubr.bf16.vlgmr.msra.gmra.mxu1 %v964_v60 }
 0x143   : > { %1134 = vmatpush1.bf16.msra.mxu0 %v1992_v16  ;;  %1177 = vmatpush1.bf16.msra.mxu1 %v1994_v17 }
 0x144   : > { %1135 = vmatprep.subr.bf16.mxu0 %v1998_v18  ;;  %1178 = vmatprep.subr.bf16.mxu1 %v2000_v19 }
 0x145   : > { %1165 = vmatprep.mubr.bf16.mxu0 %v2495_v43  ;;  %1208 = vmatprep.mubr.bf16.mxu1 %v2495_v43 }
 0x147   : > { %1136 = vmatpush1.bf16.msra.mxu0 %v2002_v20  ;;  %1179 = vmatpush1.bf16.msra.mxu1 %v2007_v21 }
 0x148   : > { %1137 = vmatprep.subr.bf16.mxu0 %v2011_v22  ;;  %1180 = vmatprep.subr.bf16.mxu1 %v2015_v23 }
 0x14b   : > { %1138 = vmatpush1.bf16.msra.mxu0 %v2020_v25  ;;  %1181 = vmatpush1.bf16.msra.mxu1 %v2024_v26 }
 0x14c   : > { %1139 = vmatprep.subr.bf16.mxu0 %v2026_v27  ;;  %1182 = vmatprep.subr.bf16.mxu1 %v2030_v28 }
 0x14f   : > { %1140 = vmatpush1.bf16.msra.mxu0 %v2036_v29  ;;  %1183 = vmatpush1.bf16.msra.mxu1 %v2038_v30 }
 0x150   : > { %1141 = vmatprep.subr.bf16.mxu0 %v2040_v31  ;;  %1184 = vmatprep.subr.bf16.mxu1 %v2044_v32 }
 0x153   : > { %1142 = vmatpush1.bf16.msra.mxu0 %v2049_v34  ;;  %1185 = vmatpush1.bf16.msra.mxu1 %v2051_v35 }
 0x154   : > { %1143 = vmatprep.subr.bf16.mxu0 %v2055_v36  ;;  %1186 = vmatprep.subr.bf16.mxu1 %v2059_v37 }
 0x157   : > { %1144 = vmatpush1.bf16.msra.mxu0 %v2066_v38  ;;  %1187 = vmatpush1.bf16.msra.mxu1 %v2070_v39 }
 0x158   : > { %1145 = vmatprep.subr.bf16.mxu0 %v2075_v41  ;;  %1188 = vmatprep.subr.bf16.mxu1 %v2077_v42 }
 0x15b   : > { %1146 = vmatpush1.bf16.msra.mxu0 %v2095_v46  ;;  %1189 = vmatpush1.bf16.msra.mxu1 %v2097_v47 }
 0x15c   : > { %1147 = vmatprep.subr.bf16.mxu0 %v2103_v49  ;;  %1190 = vmatprep.subr.bf16.mxu1 %v2105_v50 }
 0x15f   : > { %1148 = vmatpush1.bf16.msra.mxu0 %v2110_v51  ;;  %1191 = vmatpush1.bf16.msra.mxu1 %v2116_v53 }
 0x160   : > { %1301 = vmatprep.subr.bf16.mxu0 %v1987_v12  ;;  %1344 = vmatprep.subr.bf16.mxu1 %v1990_v15 }
 0x202   : > { %v999_v54 = vpop.f32.mrf.mxu0  ;;  %v1042_v55 = vpop.f32.mrf.mxu1 }
 0x203   : > { %v1051_v61 = vadd.f32 %v999_v54, %v2206_v58  ;;  %v1053_v13 = vadd.f32 %v1042_v55, %v2496_v1  ;;  %v2499_v58 = vld [vmem:[#allocation15_spill] sm:$0xff] }
 0x204   : > { %v1001_v57 = vpop.f32.mrf.mxu0  ;;  %v1044_v2 = vpop.f32.mrf.mxu1 }
 0x205   : > { %v1059_v6 = vmul.f32 0.5, %v1051_v61  ;;  %v1052_v10 = vadd.f32 %v1001_v57, %v2211_v62  ;;  %v2500_v62 = vld [vmem:[#allocation13_spill] sm:$0xff] }
 0x206   : > { %v1003_v44 = vpop.f32.mrf.mxu0  ;;  %v1046_v11 = vpop.f32.mrf.mxu1  ;;  %v1054_v14 = vadd.f32 %v1044_v2, %v2500_v62 }
 0x207   : > { %1722 = vtanh.f32 %v1059_v6  ;;  %v1067_v5 = vmul.f32 0.5, %v1052_v10  ;;  %v1055_v3 = vadd.f32 %v1003_v44, %v2497_v56  ;;  %v1057_v8 = vadd.f32 %v1046_v11, %v2499_v58  ;;  %v1103_v10 = vpop.permute.xlu1 %1102 }
 0x208   : > { %v1005_v12 = vpop.f32.mrf.mxu0  ;;  %v1048_v45 = vpop.f32.mrf.mxu1  ;;  %v1077_v63 = vmul.f32 0.5, %v1054_v14  ;;  %vm1107_vm12 = vcmp.eq.s32.totalorder %v1103_v10, 1 }
 0x209   : > { %1724 = vtanh.f32 %v1067_v5  ;;  %v1060_v15 = vmul.f32 0.5, %v1055_v3  ;;  %v1056_v0 = vadd.f32 %v1005_v12, %v2498_v59  ;;  %v1058_v4 = vadd.f32 %v1048_v45, %v2501_v9 }
 0x20a   : > { %1726 = vtanh.f32 %v1053_v13 }
 0x20b   : > { %1728 = vtanh.f32 %v1060_v15  ;;  %v1068_v33 = vmul.f32 0.5, %v1056_v0  ;;  %v1078_v6 = vmul.f32 0.5, %v1058_v4  ;;  %v1106_v0 = vpop.permute.xlu1 %1105 }
 0x20c   : > { %vm1108_vm13 = vcmp.eq.s32.totalorder %v1106_v0, 1  ;;  %v1271_v0 = vpop.permute.xlu0 %1270 }
 0x20d   : > { %1730 = vtanh.f32 %v1068_v33  ;;  %vm1275_vm14 = vcmp.eq.s32.totalorder %v1271_v0, 1 }
 0x20e   : > { %1732 = vtanh.f32 %v1057_v8 }
 0x20f   : > { %1734 = vtanh.f32 %v1077_v63 }
 0x210   : > { %1736 = vtanh.f32 %v1078_v6 }
 0x214   : > { %v1723_v48 = vpop.eup %1722 }
 0x215   : > { %v1063_v60 = vmul.f32 0.5, %v1723_v48 }
 0x216   : > { %v1725_v54 = vpop.eup %1724 }
 0x217   : > { %v1727_v55 = vpop.eup %1726  ;;  %v1065_v61 = vadd.f32 0.5, %v1063_v60  ;;  %v1071_v57 = vmul.f32 0.5, %v1725_v54 }
 0x218   : > { %v1729_v1 = vpop.eup %1728 }
 0x219   : > { %v1073_v13 = vadd.f32 0.5, %v1071_v57  ;;  %v1064_v44 = vmul.f32 0.5, %v1729_v1  ;;  %v1087_v5 = vmul.f32 %v1727_v55, %v1065_v61 }
 0x21a   : > { %v1731_v56 = vpop.eup %1730 }
 0x21b   : > { %v1066_v2 = vadd.f32 0.5, %v1064_v44  ;;  %v1072_v3 = vmul.f32 0.5, %v1731_v56  ;;  %v1085_v11 = vmul.f32 %v1073_v13, %v2279_v40  ;;  %v1733_v12 = vpop.eup %1732 }
 0x21c   : > { %v1735_v45 = vpop.eup %1734 }
 0x21d   : > { %v1074_v15 = vadd.f32 0.5, %v1072_v3  ;;  %v1089_v59 = vadd.f32 %v1087_v5, %v1085_v11  ;;  %v1088_v58 = vmul.f32 %v1733_v12, %v1066_v2  ;;  %v1081_v63 = vmul.f32 0.5, %v1735_v45  ;;  %v1737_v9 = vpop.eup %1736 }
 0x21e   : > { %v1082_v48 = vmul.f32 0.5, %v1737_v9  ;;  %v1274_v9 = vpop.permute.xlu1 %1273 }
 0x21f   : > { %1738 = vtanh.f32 %v1089_v59  ;;  %v2337_v8 = vsel %vm1107_vm12, %v1089_v59, %v2279_v40  ;;  %v1086_v33 = vmul.f32 %v1074_v15, %v2281_v52  ;;  %v1083_v4 = vadd.f32 0.5, %v1081_v63 }
 0x220   : > { %v1084_v55 = vadd.f32 0.5, %v1082_v48  ;;  %vm1276_vm15 = vcmp.eq.s32.totalorder %v1274_v9, 1 }
 0x221   : > { %v1090_v62 = vadd.f32 %v1088_v58, %v1086_v33 }
 0x223   : > { %1740 = vtanh.f32 %v1090_v62  ;;  %v2341_v14 = vsel %vm1108_vm13, %v1090_v62, %v2281_v52 }
 0x22c   : > { %v1739_v60 = vpop.eup %1738 }
 0x22d   : > { %v1093_v54 = vmul.f32 %v1739_v60, %v1083_v4 }
 0x22f   : > { %v2345_v40 = vsel %vm1107_vm12, %v1093_v54, %v2285_v24 }
 0x230   : > { %v1741_v61 = vpop.eup %1740 }
 0x231   : > { %v1094_v57 = vmul.f32 %v1741_v61, %v1084_v55 }
 0x233   : > { %v2348_v6 = vsel %vm1108_vm13, %v1094_v57, %v2288_v7 }
 0x234   : > { %v1132_v52 = vpack.c.bf16 %v2348_v6, %v2345_v40 }
 0x236   : > { %1166 = vmatmul.mubr.bf16.vlgmr.msra.gmra.mxu0 %v1132_v52  ;;  %1209 = vmatmul.mubr.bf16.vlgmr.msra.gmra.mxu1 %v1132_v52 }
 0x237   : > { %1302 = vmatpush1.bf16.msra.mxu0 %v1992_v16  ;;  %1345 = vmatpush1.bf16.msra.mxu1 %v1994_v17 }
 0x238   : > { %1303 = vmatprep.subr.bf16.mxu0 %v1998_v18  ;;  %1346 = vmatprep.subr.bf16.mxu1 %v2000_v19  ;;  %v2502_v18 = vld [vmem:[#allocation18_spill] sm:$0xff] }
 0x239   : > { %1333 = vmatprep.mubr.bf16.mxu0 %v2495_v43  ;;  %1376 = vmatprep.mubr.bf16.mxu1 %v2495_v43 }
 0x23b   : > { %1304 = vmatpush1.bf16.msra.mxu0 %v2002_v20  ;;  %1347 = vmatpush1.bf16.msra.mxu1 %v2007_v21 }
 0x23c   : > { %1305 = vmatprep.subr.bf16.mxu0 %v2011_v22  ;;  %1348 = vmatprep.subr.bf16.mxu1 %v2015_v23  ;;  %v2503_v23 = vld [vmem:[#allocation20_spill] sm:$0xff] }
 0x23f   : > { %1306 = vmatpush1.bf16.msra.mxu0 %v2020_v25  ;;  %1349 = vmatpush1.bf16.msra.mxu1 %v2024_v26  ;;  %v2504_v26 = vld [vmem:[#allocation19_spill] sm:$0xff] }
 0x240   : > { %1307 = vmatprep.subr.bf16.mxu0 %v2026_v27  ;;  %1350 = vmatprep.subr.bf16.mxu1 %v2030_v28 }
 0x243   : > { %1308 = vmatpush1.bf16.msra.mxu0 %v2036_v29  ;;  %1351 = vmatpush1.bf16.msra.mxu1 %v2038_v30  ;;  %v2505_v30 = vld [vmem:[#allocation22_spill] sm:$0xff] }
 0x244   : > { %1309 = vmatprep.subr.bf16.mxu0 %v2040_v31  ;;  %1352 = vmatprep.subr.bf16.mxu1 %v2044_v32 }
 0x247   : > { %1310 = vmatpush1.bf16.msra.mxu0 %v2049_v34  ;;  %1353 = vmatpush1.bf16.msra.mxu1 %v2051_v35 }
 0x248   : > { %1311 = vmatprep.subr.bf16.mxu0 %v2055_v36  ;;  %1354 = vmatprep.subr.bf16.mxu1 %v2059_v37  ;;  %v2506_v36 = vld [vmem:[#allocation24_spill] sm:$0xff] }
 0x24b   : > { %1312 = vmatpush1.bf16.msra.mxu0 %v2066_v38  ;;  %1355 = vmatpush1.bf16.msra.mxu1 %v2070_v39  ;;  %v2507_v38 = vld [vmem:[#allocation23_spill] sm:$0xff] }
 0x24c   : > { %1313 = vmatprep.subr.bf16.mxu0 %v2075_v41  ;;  %1356 = vmatprep.subr.bf16.mxu1 %v2077_v42  ;;  %v2508_v42 = vld [vmem:[#allocation21_spill] sm:$0xff] }
 0x24f   : > { %1314 = vmatpush1.bf16.msra.mxu0 %v2095_v46  ;;  %1357 = vmatpush1.bf16.msra.mxu1 %v2097_v47 }
 0x250   : > { %1315 = vmatprep.subr.bf16.mxu0 %v2103_v49  ;;  %1358 = vmatprep.subr.bf16.mxu1 %v2105_v50  ;;  %v2509_v50 = vld [vmem:[#allocation25_spill] sm:$0xff] }
 0x253   : > { %1316 = vmatpush1.bf16.msra.mxu0 %v2110_v51  ;;  %1359 = vmatpush1.bf16.msra.mxu1 %v2116_v53 }
 0x2f6   : > { %v1167_v16 = vpop.f32.mrf.mxu0  ;;  %v1210_v17 = vpop.f32.mrf.mxu1 }
 0x2f7   : > { %v1219_v19 = vadd.f32 %v1167_v16, %v2502_v18  ;;  %v1221_v27 = vadd.f32 %v1210_v17, %v2504_v26 }
 0x2f8   : > { %v1169_v20 = vpop.f32.mrf.mxu0  ;;  %v1212_v21 = vpop.f32.mrf.mxu1 }
 0x2f9   : > { %v1227_v22 = vmul.f32 0.5, %v1219_v19  ;;  %v1220_v25 = vadd.f32 %v1169_v20, %v2503_v23  ;;  %v1222_v46 = vadd.f32 %v1212_v21, %v2508_v42  ;;  %v2510_v23 = vld [vmem:[#allocation26_spill] sm:$0xff]  ;;  %v2515_v42 = vld [vmem:[#allocation31_spill] sm:$0xff] }
 0x2fa   : > { %v1171_v28 = vpop.f32.mrf.mxu0  ;;  %v1214_v32 = vpop.f32.mrf.mxu1 }
 0x2fb   : > { %1742 = vtanh.f32 %v1227_v22  ;;  %v1235_v29 = vmul.f32 0.5, %v1220_v25  ;;  %v1223_v31 = vadd.f32 %v1171_v28, %v2505_v30  ;;  %v1225_v39 = vadd.f32 %v1214_v32, %v2507_v38 }
 0x2fc   : > { %v1173_v34 = vpop.f32.mrf.mxu0  ;;  %v1216_v47 = vpop.f32.mrf.mxu1  ;;  %v1245_v49 = vmul.f32 0.5, %v1222_v46 }
 0x2fd   : > { %1744 = vtanh.f32 %v1235_v29  ;;  %v1228_v35 = vmul.f32 0.5, %v1223_v31  ;;  %v1224_v37 = vadd.f32 %v1173_v34, %v2506_v36  ;;  %v1226_v51 = vadd.f32 %v1216_v47, %v2509_v50  ;;  %v2511_v29 = vld [vmem:[#allocation28_spill] sm:$0xff]  ;;  %v2512_v31 = vld [vmem:[#allocation27_spill] sm:$0xff]  ;;  %v2513_v34 = vld [vmem:[#allocation30_spill] sm:$0xff] }
 0x2fe   : > { %1746 = vtanh.f32 %v1221_v27 }
 0x2ff   : > { %1748 = vtanh.f32 %v1228_v35  ;;  %v1236_v41 = vmul.f32 0.5, %v1224_v37  ;;  %v1246_v13 = vmul.f32 0.5, %v1226_v51 }
 0x301   : > { %1750 = vtanh.f32 %v1236_v41 }
 0x302   : > { %1752 = vtanh.f32 %v1225_v39  ;;  %v2514_v39 = vld [vmem:[#allocation32_spill] sm:$0xff] }
 0x303   : > { %1754 = vtanh.f32 %v1245_v49  ;;  %v2516_v49 = vld [vmem:[#allocation29_spill] sm:$0xff] }
 0x304   : > { %1756 = vtanh.f32 %v1246_v13 }
 0x308   : > { %v1743_v53 = vpop.eup %1742 }
 0x309   : > { %v1231_v24 = vmul.f32 0.5, %v1743_v53 }
 0x30a   : > { %v1745_v7 = vpop.eup %1744 }
 0x30b   : > { %v1747_v43 = vpop.eup %1746  ;;  %v1233_v10 = vadd.f32 0.5, %v1231_v24  ;;  %v1239_v1 = vmul.f32 0.5, %v1745_v7  ;;  %v2517_v24 = vld [vmem:[#allocation33_spill] sm:$0xff] }
 0x30c   : > { %v1749_v44 = vpop.eup %1748 }
 0x30d   : > { %v1241_v5 = vadd.f32 0.5, %v1239_v1  ;;  %v1255_v56 = vmul.f32 %v1747_v43, %v1233_v10  ;;  %v1232_v2 = vmul.f32 0.5, %v1749_v44 }
 0x30e   : > { %v1751_v3 = vpop.eup %1750 }
 0x30f   : > { %v1253_v11 = vmul.f32 %v1241_v5, %v2337_v8  ;;  %v1234_v12 = vadd.f32 0.5, %v1232_v2  ;;  %v1240_v15 = vmul.f32 0.5, %v1751_v3  ;;  %v1753_v59 = vpop.eup %1752 }
 0x310   : > { %v1755_v60 = vpop.eup %1754 }
 0x311   : > { %v1257_v58 = vadd.f32 %v1255_v56, %v1253_v11  ;;  %v1242_v33 = vadd.f32 0.5, %v1240_v15  ;;  %v1256_v62 = vmul.f32 %v1753_v59, %v1234_v12  ;;  %v1249_v54 = vmul.f32 0.5, %v1755_v60  ;;  %v1757_v55 = vpop.eup %1756  ;;  %v1439_v59 = vpop.permute.xlu0 %1438 }
 0x312   : > { %v1250_v57 = vmul.f32 0.5, %v1757_v55  ;;  %vm1443_vm0 = vcmp.eq.s32.totalorder %v1439_v59, 1  ;;  %v1442_v60 = vpop.permute.xlu1 %1441 }
 0x313   : > { %1758 = vtanh.f32 %v1257_v58  ;;  %v2395_v45 = vsel %vm1275_vm14, %v1257_v58, %v2337_v8  ;;  %v1254_v63 = vmul.f32 %v1242_v33, %v2341_v14  ;;  %v1251_v61 = vadd.f32 0.5, %v1249_v54 }
 0x314   : > { %v1252_v17 = vadd.f32 0.5, %v1250_v57  ;;  %vm1444_vm1 = vcmp.eq.s32.totalorder %v1442_v60, 1 }
 0x315   : > { %v1258_v4 = vadd.f32 %v1256_v62, %v1254_v63 }
 0x317   : > { %1760 = vtanh.f32 %v1258_v4  ;;  %v2399_v48 = vsel %vm1276_vm15, %v1258_v4, %v2341_v14 }
 0x320   : > { %v1759_v52 = vpop.eup %1758 }
 0x321   : > { %v1261_v16 = vmul.f32 %v1759_v52, %v1251_v61 }
 0x323   : > { %v2403_v19 = vsel %vm1275_vm14, %v1261_v16, %v2345_v40 }
 0x324   : > { %v1761_v18 = vpop.eup %1760 }
 0x325   : > { %v1262_v8 = vmul.f32 %v1761_v18, %v1252_v17 }
 0x327   : > { %v2406_v20 = vsel %vm1276_vm15, %v1262_v8, %v2348_v6 }
 0x328   : > { %v1300_v14 = vpack.c.bf16 %v2406_v20, %v2403_v19 }
 0x32a   : > { %1334 = vmatmul.mubr.bf16.vlgmr.msra.gmra.mxu0 %v1300_v14  ;;  %1377 = vmatmul.mubr.bf16.vlgmr.msra.gmra.mxu1 %v1300_v14 }
 0x3ea   : > { %v1335_v21 = vpop.f32.mrf.mxu0  ;;  %v1378_v22 = vpop.f32.mrf.mxu1 }
 0x3eb   : > { %v1387_v25 = vadd.f32 %v1335_v21, %v2510_v23  ;;  %v1389_v40 = vadd.f32 %v1378_v22, %v2512_v31 }
 0x3ec   : > { %v1337_v26 = vpop.f32.mrf.mxu0  ;;  %v1380_v27 = vpop.f32.mrf.mxu1 }
 0x3ed   : > { %v1395_v28 = vmul.f32 0.5, %v1387_v25  ;;  %v1388_v30 = vadd.f32 %v1337_v26, %v2511_v29  ;;  %v1390_v50 = vadd.f32 %v1380_v27, %v2516_v49 }
 0x3ee   : > { %v1339_v32 = vpop.f32.mrf.mxu0  ;;  %v1382_v36 = vpop.f32.mrf.mxu1 }
 0x3ef   : > { %1762 = vtanh.f32 %v1395_v28  ;;  %v1403_v6 = vmul.f32 0.5, %v1388_v30  ;;  %v1391_v35 = vadd.f32 %v1339_v32, %v2513_v34  ;;  %v1393_v46 = vadd.f32 %v1382_v36, %v2515_v42 }
 0x3f0   : > { %v1341_v37 = vpop.f32.mrf.mxu0  ;;  %v1384_v51 = vpop.f32.mrf.mxu1  ;;  %v1413_v53 = vmul.f32 0.5, %v1390_v50 }
 0x3f1   : > { %1764 = vtanh.f32 %v1403_v6  ;;  %v1396_v38 = vmul.f32 0.5, %v1391_v35  ;;  %v1392_v41 = vadd.f32 %v1341_v37, %v2514_v39  ;;  %v1394_v7 = vadd.f32 %v1384_v51, %v2517_v24 }
 0x3f2   : > { %1766 = vtanh.f32 %v1389_v40 }
 0x3f3   : > { %1768 = vtanh.f32 %v1396_v38  ;;  %v1404_v47 = vmul.f32 0.5, %v1392_v41  ;;  %v1414_v56 = vmul.f32 0.5, %v1394_v7 }
 0x3f5   : > { %1770 = vtanh.f32 %v1404_v47 }
 0x3f6   : > { %1772 = vtanh.f32 %v1393_v46 }
 0x3f7   : > { %1774 = vtanh.f32 %v1413_v53 }
 0x3f8   : > { %1776 = vtanh.f32 %v1414_v56 }
 0x3fc   : > { %v1763_v43 = vpop.eup %1762 }
 0x3fd   : > { %v1399_v10 = vmul.f32 0.5, %v1763_v43 }
 0x3fe   : > { %v1765_v1 = vpop.eup %1764 }
 0x3ff   : > { %v1767_v13 = vpop.eup %1766  ;;  %v1401_v44 = vadd.f32 0.5, %v1399_v10  ;;  %v1407_v5 = vmul.f32 0.5, %v1765_v1 }
 0x400   : > { %v1769_v2 = vpop.eup %1768 }
 0x401   : > { %v1409_v3 = vadd.f32 0.5, %v1407_v5  ;;  %v1423_v11 = vmul.f32 %v1767_v13, %v1401_v44  ;;  %v1400_v12 = vmul.f32 0.5, %v1769_v2 }
 0x402   : > { %v1771_v15 = vpop.eup %1770 }
 0x403   : > { %v1421_v0 = vmul.f32 %v1409_v3, %v2395_v45  ;;  %v1402_v58 = vadd.f32 0.5, %v1400_v12  ;;  %v1408_v33 = vmul.f32 0.5, %v1771_v15  ;;  %v1773_v62 = vpop.eup %1772 }
 0x404   : > { %v1775_v52 = vpop.eup %1774 }
 0x405   : > { %v1425_v63 = vadd.f32 %v1423_v11, %v1421_v0  ;;  %v1410_v9 = vadd.f32 0.5, %v1408_v33  ;;  %v1424_v4 = vmul.f32 %v1773_v62, %v1402_v58 }
 0x407   : > { %1778 = vtanh.f32 %v1425_v63  ;;  %v1422_v54 = vmul.f32 %v1410_v9, %v2399_v48  ;;  %v1449_v55 = vsel %vm1443_vm0, %v1425_v63, %v2395_v45 }
 0x408   : > { %1451 = vst [vmem:[#allocation7] sm:$0xff] %v1449_v55 }
 0x409   : > { %v1426_v61 = vadd.f32 %v1424_v4, %v1422_v54 }
 0x40b   : > { %1780 = vtanh.f32 %v1426_v61  ;;  %v1450_v57 = vsel %vm1444_vm1, %v1426_v61, %v2399_v48 }
 0x40c   : > { %1452 = vst [vmem:[#allocation7 + $0x8] sm:$0xff] %v1450_v57 }
 0x40d   : > { %1821 = shalt.err (!%p1818_p9)
}
 0x40e   : > { %s1881_s25 = smov 128   ;;  %s1882_s26 = smov 8   ;;  %v1417_v45 = vmul.f32 0.5, %v1775_v52  ;;  %v1777_v48 = vpop.eup %1776 }
 0x40f   : > { %1613 = dma.vmem_to_hbm [thread:$0]  (%p1624_p2), %s1473_s23, 256, %s2468_s8, [#allocation8], %s1881_s25, %s1881_s25, %s1882_s26   ;;  %v1418_v17 = vmul.f32 0.5, %v1777_v48 }
 0x410   : > { %v1419_v16 = vadd.f32 0.5, %v1417_v45  ;;  %s1883_s9 = smov [#allocation6]  }
 0x411   : > { %v1420_v14 = vadd.f32 0.5, %v1418_v17  ;;  %s1459_s10 = sshll.u32 %s1883_s9, 4  ;;  %s1460_s10 = int_to_ptr.vmem [resolvable:$true] %s1459_s10 }
 0x412   : > { %s1832_s11 = scalar_lea.vmem %s1460_s10, 256  ;;  %p1839_p13 = scmp.lt.s32.totalorder %s1460_s10, %s1460_s10 }
 0x413   : > { %p1833_p10 = scmp.ne.s32.totalorder %s1460_s10, %s1832_s11  ;;  %p1840_p0 = scmp.lt.s32.totalorder %s1832_s11, %s1832_s11 }
 0x414   : > { %v1779_v18 = vpop.eup %1778 }
 0x415   : > { %v1429_v8 = vmul.f32 %v1779_v18, %v1419_v16  ;;  %p1834_p11 = pnand %p1833_p10, %p1624_p2  ;;  %p1841_p1 = por %p1840_p0, %p1839_p13 }
 0x417   : > { %v1445_v21 = vsel %vm1443_vm0, %v1429_v8, %v2403_v19  ;;  %p1835_p12 = pneg %p1834_p11 }
 0x418   : > { %v1781_v22 = vpop.eup %1780  ;;  %1447 = vst [vmem:[#allocation6] sm:$0xff] %v1445_v21 }
 0x419   : > { %v1430_v23 = vmul.f32 %v1781_v22, %v1420_v14  ;;  %p1842_p3 = pnand %p1841_p1, %p1835_p12 }
 0x41b   : > { %v1446_v25 = vsel %vm1444_vm1, %v1430_v23, %v2406_v20 }
 0x41c   : > { %1448 = vst [vmem:[#allocation6 + $0x8] sm:$0xff] %v1446_v25 }
 0x41d   : > { %1845 = shalt.err (!%p1842_p3)
}
 0x41e   : > { %1611 = dma.vmem_to_hbm [thread:$0]  (%p1624_p2), %s1460_s10, 256, %s2467_s7, [#allocation5], %s1881_s25, %s1881_s25, %s1882_s26  }
 0x41f   : > { %1865 = dma.done.wait (%p1624_p2), [#allocation5], 256  }
 0x420   : > { %1867 = vsyncadd (%p1624_p2), [#allocation5], 4294967040 }
 0x421   : > { %1869 = dma.done.wait (%p1624_p2), [#allocation8], 256  }
 0x422   : > { %1871 = vsyncadd (%p1624_p2), [#allocation8], 4294967040 }
 0x423 PF: > { %s22_s27 = sadd.s32 1, %s1874_s27  }
 0x424   : > { %p19_p4 = scmp.ge.s32.totalorder %s22_s27, 4  }
 0x426   :  { %21 = sbr.rel (!%p19_p4) target bundleno = 3 (0x3), region = 96 }
 0x42b   :  { %1492 = vsyncpa [#allocation4], 1 }
 0x42c   :  { %1494 = vsyncpa [#allocation4 + $0x1], 1 }
 0x42d   :  { %1495 = vsyncpa [#allocation5], 1 }
 0x42e   :  { %1497 = vsyncpa [#allocation5 + $0x1], 1 }
 0x42f   :  { %1498 = vsyncpa [#allocation8], 1 }

</bundles_post_ra>
